<compile_context>
chip_gen: v5e
topology: v5e:2x2
jax: 0.10.0
libtpu: 0.0.40
codegen_flags: <defaults>
</compile_context>

<pallas_src>
import functools

import jax
import jax.numpy as jnp
from jax import lax
from jax.experimental import pallas as pl
from jax.experimental.pallas import tpu as pltpu


def _se_block_kernel(x_ref, *refs, stride, has_expand, use_res_connect):
    if has_expand:
        (w1_ref, b1_ref, wdw_ref, bdw_ref, w2_ref, b2_ref,
         wse1t_ref, bse1_ref, wse2_ref, bse2_ref, o_ref, pad_ref) = refs
    else:
        w1_ref = b1_ref = None
        (wdw_ref, bdw_ref, w2_ref, b2_ref,
         wse1t_ref, bse1_ref, wse2_ref, bse2_ref, o_ref, pad_ref) = refs

    x = x_ref[...]                                      # (Bblk, H, W, Cin) bf16
    Bblk, H, W, Cin = x.shape
    hidden = wdw_ref.shape[-1]
    _, Ho, Wo, Cout = o_ref.shape

    # ---- 1x1 expand conv (+ folded BN) + ReLU6: bf16 operands on the MXU ----
    if has_expand:
        t = jnp.dot(x.reshape(Bblk * H * W, Cin), w1_ref[...],
                    preferred_element_type=jnp.float32) + b1_ref[...]
        t = jnp.clip(t, 0.0, 6.0).reshape(Bblk, H, W, hidden)
    else:
        t = x.astype(jnp.float32)                       # hidden == Cin here

    # ---- depthwise 3x3 conv, padding=1, groups=hidden (+ folded BN) + ReLU6 ----
    # H-padded-only scratch (per image); only the two halo rows are cleared
    # each step (cheap; stays correct under megacore sharding of the grid).
    zero_rows = jnp.zeros((Bblk, 1, W, hidden), jnp.float32)
    pad_ref[:, 0:1, :, :] = zero_rows
    pad_ref[:, H + 1:H + 2, :, :] = zero_rows
    pad_ref[:, 1:H + 1, :, :] = t

    wdw = wdw_ref[...]                                  # (9, hidden), single load
    bdw = bdw_ref[...]                                  # (1, hidden)

    # Hoisted edge masks (broadcast over leading dims).
    col = lax.broadcasted_iota(jnp.int32, (W, hidden), 0)
    not_left = col != 0
    not_right = col != W - 1

    def rows(kh):
        # Full-resolution H window; images stacked on the leading (major) dim
        # so the column roll below stays the previously-validated 3-D form.
        return pad_ref[:, kh:kh + H, :, :].reshape(Bblk * H, W, hidden)

    # Running accumulator with short live ranges: center-column taps first,
    # then the masked left / right rolls (XLU slot), loading each row slice
    # where it is consumed.
    acc = rows(0) * wdw[1:2]
    acc = acc + rows(1) * wdw[4:5]
    acc = acc + rows(2) * wdw[7:8]

    s_side = rows(0) * wdw[0:1]
    s_side = s_side + rows(1) * wdw[3:4]
    s_side = s_side + rows(2) * wdw[6:7]
    acc = acc + jnp.where(not_left, pltpu.roll(s_side, shift=1, axis=1), 0.0)

    s_side = rows(0) * wdw[2:3]
    s_side = s_side + rows(1) * wdw[5:6]
    s_side = s_side + rows(2) * wdw[8:9]
    acc = acc + jnp.where(not_right, pltpu.roll(s_side, shift=W - 1, axis=1), 0.0)

    if stride != 1:
        # Compute at full resolution, subsample H (major dim) and W (sublanes).
        acc = acc.reshape(Bblk, H, W, hidden)[:, ::stride, ::stride, :]
    acc = jnp.clip(acc + bdw, 0.0, 6.0)                 # (..., hidden) f32

    # ---- 1x1 projection conv (+ folded BN), linear: bf16 operands on the MXU ----
    y = jnp.dot(acc.reshape(Bblk * Ho * Wo, hidden).astype(jnp.bfloat16),
                w2_ref[...], preferred_element_type=jnp.float32) + b2_ref[...]
    y = y.reshape(Bblk, Ho * Wo, Cout)

    # ---- SE: per-image global avg pool -> FC -> ReLU -> FC -> sigmoid ----
    # M = Bblk is tiny, so the two FCs run on the VPU (broadcast-multiply +
    # lane reduction over Cout) instead of paying MXU push/pop latency on the
    # serial tail of every grid step.
    pooled = jnp.mean(y, axis=1)                        # (Bblk, Cout)
    wse1t = wse1t_ref[...]                              # (R, Cout)
    wse2 = wse2_ref[...]                                # (R, Cout)
    bse1 = bse1_ref[...]                                # (1, R)
    R = wse2.shape[0]
    s_lin = bse2_ref[...]                               # (1, Cout), broadcasts up
    for r in range(R):
        zr = jnp.sum(pooled * wse1t[r:r + 1, :], axis=-1, keepdims=True)
        zr = jnp.maximum(zr + bse1[:, r:r + 1], 0.0)    # (Bblk, 1)
        s_lin = s_lin + zr * wse2[r:r + 1, :]           # (Bblk, Cout)
    y = y * jax.nn.sigmoid(s_lin)[:, None, :]

    if use_res_connect:
        y = y + x.reshape(Bblk, H * W, Cin).astype(jnp.float32)

    o_ref[...] = y.reshape(Bblk, Ho, Wo, Cout).astype(o_ref.dtype)


def _pick_block_b(B, max_block=8):
    """Largest divisor of B (<= max_block) that leaves >=2 grid steps
    (>=4 when B >= 4), so a v7x megacore keeps both TensorCores fed while
    steps stay as fat as possible."""
    min_steps = 4 if B >= 4 else 2
    best = 1
    for d in range(1, min(B, max_block) + 1):
        if B % d == 0 and B // d >= min_steps:
            best = d
    return best


def se_basic_block(x_nhwc, params, *, stride, expand_ratio, use_res_connect,
                   block_b=None):
    assert stride in (1, 2)
    B, H, W, Cin = x_nhwc.shape
    hidden = params['wdw'].shape[-1]
    Cout = params['w2'].shape[-1]
    Ho = (H + 2 - 3) // stride + 1
    Wo = (W + 2 - 3) // stride + 1
    has_expand = expand_ratio != 1

    Bblk = _pick_block_b(B) if block_b is None else block_b
    assert B % Bblk == 0, (B, Bblk)

    kernel = functools.partial(_se_block_kernel, stride=stride,
                               has_expand=has_expand,
                               use_res_connect=use_res_connect)

    def full(arr):
        shape = arr.shape
        return pl.BlockSpec(shape, lambda *_a, _n=len(shape): (0,) * _n)

    # bf16 activations/weights at the HBM boundary; MXU-native operands.
    x_in = x_nhwc.astype(jnp.bfloat16)
    w1 = params['w1'].astype(jnp.bfloat16) if has_expand else None
    w2 = params['w2'].astype(jnp.bfloat16)
    wdw9 = params['wdw'].reshape(9, hidden)             # depthwise taps, row-major
    wse1_t = params['wse1'].T                           # (R, Cout) for the VPU SE path

    args = [x_in]
    in_specs = [pl.BlockSpec((Bblk, H, W, Cin), lambda b: (b, 0, 0, 0))]
    if has_expand:
        args += [w1, params['b1']]
        in_specs += [full(w1), full(params['b1'])]
    args += [wdw9, params['bdw'], w2, params['b2'],
             wse1_t, params['bse1'], params['wse2'], params['bse2']]
    in_specs += [full(wdw9), full(params['bdw']), full(w2), full(params['b2']),
                 full(wse1_t), full(params['bse1']),
                 full(params['wse2']), full(params['bse2'])]

    out_specs = pl.BlockSpec((Bblk, Ho, Wo, Cout), lambda b: (b, 0, 0, 0))

    return pl.pallas_call(
        kernel,
        out_shape=jax.ShapeDtypeStruct((B, Ho, Wo, Cout), x_nhwc.dtype),
        grid_spec=pltpu.PrefetchScalarGridSpec(
            num_scalar_prefetch=0,
            grid=(B // Bblk,),
            in_specs=in_specs,
            out_specs=out_specs,
            scratch_shapes=[pltpu.VMEM((Bblk, H + 2, W, hidden), jnp.float32)]),
        compiler_params=pltpu.CompilerParams(
            dimension_semantics=("parallel",)),
    )(*args)


def make_params(key, inp, oup, expand_ratio, reduction=16):
    """Deterministic synthetic parameters; BN (eval mode) folded into conv weights."""
    hidden = int(inp * expand_ratio)
    keys = jax.random.split(key, 10)

    def bn_fold(k, c):
        k1, k2, k3, k4 = jax.random.split(k, 4)
        gamma = 1.0 + 0.1 * jax.random.normal(k1, (c,), jnp.float32)
        beta = 0.1 * jax.random.normal(k2, (c,), jnp.float32)
        mean = 0.1 * jax.random.normal(k3, (c,), jnp.float32)
        var = 1.0 + 0.1 * jax.random.uniform(k4, (c,), jnp.float32)
        scale = gamma / jnp.sqrt(var + 1e-5)
        bias = beta - mean * scale
        return scale, bias

    p = {}
    if expand_ratio != 1:
        w1 = 0.1 * jax.random.normal(keys[0], (inp, hidden), jnp.float32)
        s1, b1 = bn_fold(keys[1], hidden)
        p['w1'] = w1 * s1[None, :]
        p['b1'] = b1[None, :]

    wdw = 0.1 * jax.random.normal(keys[2], (3, 3, hidden), jnp.float32)
    sdw, bdw = bn_fold(keys[3], hidden)
    p['wdw'] = wdw * sdw[None, None, :]
    p['bdw'] = bdw[None, :]

    w2 = 0.1 * jax.random.normal(keys[4], (hidden, oup), jnp.float32)
    s2, b2 = bn_fold(keys[5], oup)
    p['w2'] = w2 * s2[None, :]
    p['b2'] = b2[None, :]

    r = max(oup // reduction, 1)
    p['wse1'] = 0.1 * jax.random.normal(keys[6], (oup, r), jnp.float32)
    p['bse1'] = 0.1 * jax.random.normal(keys[7], (1, r), jnp.float32)
    p['wse2'] = 0.1 * jax.random.normal(keys[8], (r, oup), jnp.float32)
    p['bse2'] = 0.1 * jax.random.normal(keys[9], (1, oup), jnp.float32)
    return p


def reference(x_nhwc, params, *, stride, expand_ratio, use_res_connect):
    """Pure-JAX reference of the PyTorch forward (NHWC), mirroring the kernel's
    mixed precision (bf16 activations at the boundary, bf16 matmul operands,
    f32 accumulation/depthwise)."""
    def q(a):  # bf16 operand quantization (exact f32 round-trip)
        return a.astype(jnp.bfloat16).astype(jnp.float32)

    xq = q(x_nhwc)
    t = xq
    if expand_ratio != 1:
        t = jnp.einsum('nhwc,cd->nhwd', t, q(params['w1'])) + params['b1']
        t = jnp.clip(t, 0.0, 6.0)
    hidden = t.shape[-1]
    dwk = params['wdw'].reshape(3, 3, 1, hidden)
    t = lax.conv_general_dilated(
        t, dwk, window_strides=(stride, stride), padding=((1, 1), (1, 1)),
        dimension_numbers=('NHWC', 'HWIO', 'NHWC'),
        feature_group_count=hidden) + params['bdw'][None]
    t = jnp.clip(t, 0.0, 6.0)
    y = jnp.einsum('nhwc,cd->nhwd', q(t), q(params['w2'])) + params['b2']
    pooled = jnp.mean(y, axis=(1, 2))                                 # (N, Cout)
    z = jnp.maximum(pooled @ params['wse1'] + params['bse1'], 0.0)
    s = jax.nn.sigmoid(z @ params['wse2'] + params['bse2'])
    y = y * s[:, None, None, :]
    if use_res_connect:
        y = y + xq
    return y


if __name__ == "__main__":
    key = jax.random.PRNGKey(0)
    k1, k2, k3, k4 = jax.random.split(key, 4)

    def run_case(kx, kp, *, B, Cin, H, W, Cout, stride, expand_ratio, reduction=16):
        use_res = (stride == 1 and Cin == Cout)
        x_nchw = jax.random.normal(kx, (B, Cin, H, W), jnp.float32)   # PyTorch NCHW
        x_nhwc = jnp.transpose(x_nchw, (0, 2, 3, 1))                  # kernel layout
        params = make_params(kp, Cin, Cout, expand_ratio, reduction=reduction)
        out = se_basic_block(x_nhwc, params, stride=stride,
                             expand_ratio=expand_ratio, use_res_connect=use_res)
        out = jax.block_until_ready(out)
        ref = reference(x_nhwc, params, stride=stride, expand_ratio=expand_ratio,
                        use_res_connect=use_res)
        assert out.shape == ref.shape, (out.shape, ref.shape)
        err = float(jnp.max(jnp.abs(out - ref)))
        assert err < 1e-2, f"max abs error {err}"   # bf16-matmul tolerance

    # stride=1, expand_ratio=2, inp == oup -> residual connection exercised.
    run_case(k1, k2, B=2, Cin=32, H=16, W=16, Cout=32, stride=1, expand_ratio=2)
    # stride=2, expand_ratio=1 -> no expand conv, strided depthwise, no residual.
    run_case(k3, k4, B=2, Cin=32, H=16, W=16, Cout=48, stride=2, expand_ratio=1)

    print("KERNEL_OK")
</pallas_src>

<mosaic_0001>
module attributes {stable_mosaic.version = 11 : i64} {
  func.func @_se_block_kernel(%arg0: i32, %arg1: memref<1x16x16x32xbf16, #tpu.memory_space<vmem>>, %arg2: memref<32x64xbf16, #tpu.memory_space<vmem>>, %arg3: memref<1x64xf32, #tpu.memory_space<vmem>>, %arg4: memref<9x64xf32, #tpu.memory_space<vmem>>, %arg5: memref<1x64xf32, #tpu.memory_space<vmem>>, %arg6: memref<64x32xbf16, #tpu.memory_space<vmem>>, %arg7: memref<1x32xf32, #tpu.memory_space<vmem>>, %arg8: memref<2x32xf32, #tpu.memory_space<vmem>>, %arg9: memref<1x2xf32, #tpu.memory_space<vmem>>, %arg10: memref<2x32xf32, #tpu.memory_space<vmem>>, %arg11: memref<1x32xf32, #tpu.memory_space<vmem>>, %arg12: memref<1x16x16x32xf32, #tpu.memory_space<vmem>>, %arg13: memref<1x18x16x64xf32, #tpu.memory_space<vmem>>) attributes {dimension_semantics = [#tpu.dimension_semantics<parallel>], iteration_bounds = array<i64: 2>, scalar_prefetch = 0 : i64, scratch_operands = 1 : i64, tpu.core_type = #tpu.core_type<tc>, window_params = [{transform_indices = @transform_0, window_bounds = array<i64: 1, 16, 16, 32>}, {pipeline_mode = #tpu.pipeline_mode<synchronous>, transform_indices = @transform_1, window_bounds = array<i64: 32, 64>}, {pipeline_mode = #tpu.pipeline_mode<synchronous>, transform_indices = @transform_2, window_bounds = array<i64: 1, 64>}, {pipeline_mode = #tpu.pipeline_mode<synchronous>, transform_indices = @transform_3, window_bounds = array<i64: 9, 64>}, {pipeline_mode = #tpu.pipeline_mode<synchronous>, transform_indices = @transform_4, window_bounds = array<i64: 1, 64>}, {pipeline_mode = #tpu.pipeline_mode<synchronous>, transform_indices = @transform_5, window_bounds = array<i64: 64, 32>}, {pipeline_mode = #tpu.pipeline_mode<synchronous>, transform_indices = @transform_6, window_bounds = array<i64: 1, 32>}, {pipeline_mode = #tpu.pipeline_mode<synchronous>, transform_indices = @transform_7, window_bounds = array<i64: 2, 32>}, {pipeline_mode = #tpu.pipeline_mode<synchronous>, transform_indices = @transform_8, window_bounds = array<i64: 1, 2>}, {pipeline_mode = #tpu.pipeline_mode<synchronous>, transform_indices = @transform_9, window_bounds = array<i64: 2, 32>}, {pipeline_mode = #tpu.pipeline_mode<synchronous>, transform_indices = @transform_10, window_bounds = array<i64: 1, 32>}, {transform_indices = @transform_11, window_bounds = array<i64: 1, 16, 16, 32>}]} {
    %c0 = arith.constant 0 : index
    %c0_0 = arith.constant 0 : index
    %c0_1 = arith.constant 0 : index
    %c0_2 = arith.constant 0 : index
    %0 = vector.load %arg1[%c0, %c0_0, %c0_1, %c0_2] : memref<1x16x16x32xbf16, #tpu.memory_space<vmem>>, vector<1x16x16x32xbf16>
    %1 = vector.shape_cast %0 : vector<1x16x16x32xbf16> to vector<256x32xbf16>
    %c0_3 = arith.constant 0 : index
    %c0_4 = arith.constant 0 : index
    %2 = vector.load %arg2[%c0_3, %c0_4] : memref<32x64xbf16, #tpu.memory_space<vmem>>, vector<32x64xbf16>
    %cst = arith.constant dense<0.000000e+00> : vector<256x64xf32>
    %3 = tpu.matmul %1, %2, %cst {dimension_numbers = #tpu.dot_dimension_numbers<[1], [0], [0], [1], [0, 0, 1, 1], [], []>} : vector<256x32xbf16>, vector<32x64xbf16>, vector<256x64xf32> -> vector<256x64xf32>
    %c0_5 = arith.constant 0 : index
    %c0_6 = arith.constant 0 : index
    %4 = vector.load %arg3[%c0_5, %c0_6] : memref<1x64xf32, #tpu.memory_space<vmem>>, vector<1x64xf32>
    %5 = vector.broadcast %4 : vector<1x64xf32> to vector<256x64xf32>
    %6 = arith.addf %3, %5 : vector<256x64xf32>
    %cst_7 = arith.constant 0.000000e+00 : f32
    %cst_8 = arith.constant 6.000000e+00 : f32
    %7 = vector.broadcast %cst_7 : f32 to vector<256x64xf32>
    %8 = arith.maximumf %7, %6 : vector<256x64xf32>
    %9 = vector.broadcast %cst_8 : f32 to vector<256x64xf32>
    %10 = arith.minimumf %9, %8 : vector<256x64xf32>
    %11 = vector.shape_cast %10 : vector<256x64xf32> to vector<1x16x16x64xf32>
    %cst_9 = arith.constant 0.000000e+00 : f32
    %12 = vector.broadcast %cst_9 : f32 to vector<1x1x16x64xf32>
    %c0_10 = arith.constant 0 : index
    %c0_11 = arith.constant 0 : index
    %c0_12 = arith.constant 0 : index
    %c0_13 = arith.constant 0 : index
    %13 = vector.load %arg13[%c0_10, %c0_11, %c0_12, %c0_13] : memref<1x18x16x64xf32, #tpu.memory_space<vmem>>, vector<1x1x16x64xf32>
    tpu.vector_store %arg13[%c0_10, %c0_11, %c0_12, %c0_13], %12 {strides = array<i32>} : memref<1x18x16x64xf32, #tpu.memory_space<vmem>>, vector<1x1x16x64xf32>,
    %c0_14 = arith.constant 0 : index
    %c17 = arith.constant 17 : index
    %c0_15 = arith.constant 0 : index
    %c0_16 = arith.constant 0 : index
    %14 = vector.load %arg13[%c0_14, %c17, %c0_15, %c0_16] : memref<1x18x16x64xf32, #tpu.memory_space<vmem>>, vector<1x1x16x64xf32>
    tpu.vector_store %arg13[%c0_14, %c17, %c0_15, %c0_16], %12 {strides = array<i32>} : memref<1x18x16x64xf32, #tpu.memory_space<vmem>>, vector<1x1x16x64xf32>,
    %c0_17 = arith.constant 0 : index
    %c1 = arith.constant 1 : index
    %c0_18 = arith.constant 0 : index
    %c0_19 = arith.constant 0 : index
    %15 = vector.load %arg13[%c0_17, %c1, %c0_18, %c0_19] : memref<1x18x16x64xf32, #tpu.memory_space<vmem>>, vector<1x16x16x64xf32>
    tpu.vector_store %arg13[%c0_17, %c1, %c0_18, %c0_19], %11 {strides = array<i32>} : memref<1x18x16x64xf32, #tpu.memory_space<vmem>>, vector<1x16x16x64xf32>,
    %c0_20 = arith.constant 0 : index
    %c0_21 = arith.constant 0 : index
    %16 = vector.load %arg4[%c0_20, %c0_21] : memref<9x64xf32, #tpu.memory_space<vmem>>, vector<9x64xf32>
    %c0_22 = arith.constant 0 : index
    %c0_23 = arith.constant 0 : index
    %17 = vector.load %arg5[%c0_22, %c0_23] : memref<1x64xf32, #tpu.memory_space<vmem>>, vector<1x64xf32>
    %18 = tpu.iota {dimensions = array<i32: 0>} : vector<16x64xi32>
    %c0_i32 = arith.constant 0 : i32
    %19 = vector.broadcast %c0_i32 : i32 to vector<16x64xi32>
    %20 = arith.cmpi ne, %18, %19 : vector<16x64xi32>
    %c15_i32 = arith.constant 15 : i32
    %21 = vector.broadcast %c15_i32 : i32 to vector<16x64xi32>
    %22 = arith.cmpi ne, %18, %21 : vector<16x64xi32>
    %c0_24 = arith.constant 0 : index
    %c0_25 = arith.constant 0 : index
    %c0_26 = arith.constant 0 : index
    %c0_27 = arith.constant 0 : index
    %23 = vector.load %arg13[%c0_24, %c0_25, %c0_26, %c0_27] : memref<1x18x16x64xf32, #tpu.memory_space<vmem>>, vector<1x16x16x64xf32>
    %24 = vector.shape_cast %23 : vector<1x16x16x64xf32> to vector<16x16x64xf32>
    %25 = vector.extract_strided_slice %16 {offsets = [1, 0], sizes = [1, 64], strides = [1, 1]} : vector<9x64xf32> to vector<1x64xf32>
    %26 = vector.shape_cast %25 : vector<1x64xf32> to vector<1x1x64xf32>
    %27 = vector.broadcast %26 : vector<1x1x64xf32> to vector<16x16x64xf32>
    %28 = arith.mulf %24, %27 : vector<16x16x64xf32>
    %c0_28 = arith.constant 0 : index
    %c1_29 = arith.constant 1 : index
    %c0_30 = arith.constant 0 : index
    %c0_31 = arith.constant 0 : index
    %29 = vector.load %arg13[%c0_28, %c1_29, %c0_30, %c0_31] : memref<1x18x16x64xf32, #tpu.memory_space<vmem>>, vector<1x16x16x64xf32>
    %30 = vector.shape_cast %29 : vector<1x16x16x64xf32> to vector<16x16x64xf32>
    %31 = vector.extract_strided_slice %16 {offsets = [4, 0], sizes = [1, 64], strides = [1, 1]} : vector<9x64xf32> to vector<1x64xf32>
    %32 = vector.shape_cast %31 : vector<1x64xf32> to vector<1x1x64xf32>
    %33 = vector.broadcast %32 : vector<1x1x64xf32> to vector<16x16x64xf32>
    %34 = arith.mulf %30, %33 : vector<16x16x64xf32>
    %35 = arith.addf %28, %34 : vector<16x16x64xf32>
    %c0_32 = arith.constant 0 : index
    %c2 = arith.constant 2 : index
    %c0_33 = arith.constant 0 : index
    %c0_34 = arith.constant 0 : index
    %36 = vector.load %arg13[%c0_32, %c2, %c0_33, %c0_34] : memref<1x18x16x64xf32, #tpu.memory_space<vmem>>, vector<1x16x16x64xf32>
    %37 = vector.shape_cast %36 : vector<1x16x16x64xf32> to vector<16x16x64xf32>
    %38 = vector.extract_strided_slice %16 {offsets = [7, 0], sizes = [1, 64], strides = [1, 1]} : vector<9x64xf32> to vector<1x64xf32>
    %39 = vector.shape_cast %38 : vector<1x64xf32> to vector<1x1x64xf32>
    %40 = vector.broadcast %39 : vector<1x1x64xf32> to vector<16x16x64xf32>
    %41 = arith.mulf %37, %40 : vector<16x16x64xf32>
    %42 = arith.addf %35, %41 : vector<16x16x64xf32>
    %c0_35 = arith.constant 0 : index
    %c0_36 = arith.constant 0 : index
    %c0_37 = arith.constant 0 : index
    %c0_38 = arith.constant 0 : index
    %43 = vector.load %arg13[%c0_35, %c0_36, %c0_37, %c0_38] : memref<1x18x16x64xf32, #tpu.memory_space<vmem>>, vector<1x16x16x64xf32>
    %44 = vector.shape_cast %43 : vector<1x16x16x64xf32> to vector<16x16x64xf32>
    %45 = vector.extract_strided_slice %16 {offsets = [0, 0], sizes = [1, 64], strides = [1, 1]} : vector<9x64xf32> to vector<1x64xf32>
    %46 = vector.shape_cast %45 : vector<1x64xf32> to vector<1x1x64xf32>
    %47 = vector.broadcast %46 : vector<1x1x64xf32> to vector<16x16x64xf32>
    %48 = arith.mulf %44, %47 : vector<16x16x64xf32>
    %c0_39 = arith.constant 0 : index
    %c1_40 = arith.constant 1 : index
    %c0_41 = arith.constant 0 : index
    %c0_42 = arith.constant 0 : index
    %49 = vector.load %arg13[%c0_39, %c1_40, %c0_41, %c0_42] : memref<1x18x16x64xf32, #tpu.memory_space<vmem>>, vector<1x16x16x64xf32>
    %50 = vector.shape_cast %49 : vector<1x16x16x64xf32> to vector<16x16x64xf32>
    %51 = vector.extract_strided_slice %16 {offsets = [3, 0], sizes = [1, 64], strides = [1, 1]} : vector<9x64xf32> to vector<1x64xf32>
    %52 = vector.shape_cast %51 : vector<1x64xf32> to vector<1x1x64xf32>
    %53 = vector.broadcast %52 : vector<1x1x64xf32> to vector<16x16x64xf32>
    %54 = arith.mulf %50, %53 : vector<16x16x64xf32>
    %55 = arith.addf %48, %54 : vector<16x16x64xf32>
    %c0_43 = arith.constant 0 : index
    %c2_44 = arith.constant 2 : index
    %c0_45 = arith.constant 0 : index
    %c0_46 = arith.constant 0 : index
    %56 = vector.load %arg13[%c0_43, %c2_44, %c0_45, %c0_46] : memref<1x18x16x64xf32, #tpu.memory_space<vmem>>, vector<1x16x16x64xf32>
    %57 = vector.shape_cast %56 : vector<1x16x16x64xf32> to vector<16x16x64xf32>
    %58 = vector.extract_strided_slice %16 {offsets = [6, 0], sizes = [1, 64], strides = [1, 1]} : vector<9x64xf32> to vector<1x64xf32>
    %59 = vector.shape_cast %58 : vector<1x64xf32> to vector<1x1x64xf32>
    %60 = vector.broadcast %59 : vector<1x1x64xf32> to vector<16x16x64xf32>
    %61 = arith.mulf %57, %60 : vector<16x16x64xf32>
    %62 = arith.addf %55, %61 : vector<16x16x64xf32>
    %c1_i32 = arith.constant 1 : i32
    %63 = tpu.dynamic_rotate %62 by %c1_i32 dim 1 : vector<16x16x64xf32>, i32 -> vector<16x16x64xf32>
    %cst_47 = arith.constant 0.000000e+00 : f32
    %64 = vector.shape_cast %20 : vector<16x64xi1> to vector<1x16x64xi1>
    %65 = vector.broadcast %64 : vector<1x16x64xi1> to vector<16x16x64xi1>
    %66 = vector.broadcast %cst_47 : f32 to vector<16x16x64xf32>
    %67 = arith.select %65, %63, %66 : vector<16x16x64xi1>, vector<16x16x64xf32>
    %68 = arith.addf %42, %67 : vector<16x16x64xf32>
    %c0_48 = arith.constant 0 : index
    %c0_49 = arith.constant 0 : index
    %c0_50 = arith.constant 0 : index
    %c0_51 = arith.constant 0 : index
    %69 = vector.load %arg13[%c0_48, %c0_49, %c0_50, %c0_51] : memref<1x18x16x64xf32, #tpu.memory_space<vmem>>, vector<1x16x16x64xf32>
    %70 = vector.shape_cast %69 : vector<1x16x16x64xf32> to vector<16x16x64xf32>
    %71 = vector.extract_strided_slice %16 {offsets = [2, 0], sizes = [1, 64], strides = [1, 1]} : vector<9x64xf32> to vector<1x64xf32>
    %72 = vector.shape_cast %71 : vector<1x64xf32> to vector<1x1x64xf32>
    %73 = vector.broadcast %72 : vector<1x1x64xf32> to vector<16x16x64xf32>
    %74 = arith.mulf %70, %73 : vector<16x16x64xf32>
    %c0_52 = arith.constant 0 : index
    %c1_53 = arith.constant 1 : index
    %c0_54 = arith.constant 0 : index
    %c0_55 = arith.constant 0 : index
    %75 = vector.load %arg13[%c0_52, %c1_53, %c0_54, %c0_55] : memref<1x18x16x64xf32, #tpu.memory_space<vmem>>, vector<1x16x16x64xf32>
    %76 = vector.shape_cast %75 : vector<1x16x16x64xf32> to vector<16x16x64xf32>
    %77 = vector.extract_strided_slice %16 {offsets = [5, 0], sizes = [1, 64], strides = [1, 1]} : vector<9x64xf32> to vector<1x64xf32>
    %78 = vector.shape_cast %77 : vector<1x64xf32> to vector<1x1x64xf32>
    %79 = vector.broadcast %78 : vector<1x1x64xf32> to vector<16x16x64xf32>
    %80 = arith.mulf %76, %79 : vector<16x16x64xf32>
    %81 = arith.addf %74, %80 : vector<16x16x64xf32>
    %c0_56 = arith.constant 0 : index
    %c2_57 = arith.constant 2 : index
    %c0_58 = arith.constant 0 : index
    %c0_59 = arith.constant 0 : index
    %82 = vector.load %arg13[%c0_56, %c2_57, %c0_58, %c0_59] : memref<1x18x16x64xf32, #tpu.memory_space<vmem>>, vector<1x16x16x64xf32>
    %83 = vector.shape_cast %82 : vector<1x16x16x64xf32> to vector<16x16x64xf32>
    %84 = vector.extract_strided_slice %16 {offsets = [8, 0], sizes = [1, 64], strides = [1, 1]} : vector<9x64xf32> to vector<1x64xf32>
    %85 = vector.shape_cast %84 : vector<1x64xf32> to vector<1x1x64xf32>
    %86 = vector.broadcast %85 : vector<1x1x64xf32> to vector<16x16x64xf32>
    %87 = arith.mulf %83, %86 : vector<16x16x64xf32>
    %88 = arith.addf %81, %87 : vector<16x16x64xf32>
    %c15_i32_60 = arith.constant 15 : i32
    %89 = tpu.dynamic_rotate %88 by %c15_i32_60 dim 1 : vector<16x16x64xf32>, i32 -> vector<16x16x64xf32>
    %cst_61 = arith.constant 0.000000e+00 : f32
    %90 = vector.shape_cast %22 : vector<16x64xi1> to vector<1x16x64xi1>
    %91 = vector.broadcast %90 : vector<1x16x64xi1> to vector<16x16x64xi1>
    %92 = vector.broadcast %cst_61 : f32 to vector<16x16x64xf32>
    %93 = arith.select %91, %89, %92 : vector<16x16x64xi1>, vector<16x16x64xf32>
    %94 = arith.addf %68, %93 : vector<16x16x64xf32>
    %95 = vector.shape_cast %17 : vector<1x64xf32> to vector<1x1x64xf32>
    %96 = vector.broadcast %95 : vector<1x1x64xf32> to vector<16x16x64xf32>
    %97 = arith.addf %94, %96 : vector<16x16x64xf32>
    %cst_62 = arith.constant 0.000000e+00 : f32
    %cst_63 = arith.constant 6.000000e+00 : f32
    %98 = vector.broadcast %cst_62 : f32 to vector<16x16x64xf32>
    %99 = arith.maximumf %98, %97 : vector<16x16x64xf32>
    %100 = vector.broadcast %cst_63 : f32 to vector<16x16x64xf32>
    %101 = arith.minimumf %100, %99 : vector<16x16x64xf32>
    %102 = vector.shape_cast %101 : vector<16x16x64xf32> to vector<256x64xf32>
    %103 = arith.truncf %102 : vector<256x64xf32> to vector<256x64xbf16>
    %c0_64 = arith.constant 0 : index
    %c0_65 = arith.constant 0 : index
    %104 = vector.load %arg6[%c0_64, %c0_65] : memref<64x32xbf16, #tpu.memory_space<vmem>>, vector<64x32xbf16>
    %cst_66 = arith.constant dense<0.000000e+00> : vector<256x32xf32>
    %105 = tpu.matmul %103, %104, %cst_66 {dimension_numbers = #tpu.dot_dimension_numbers<[1], [0], [0], [1], [0, 0, 1, 1], [], []>} : vector<256x64xbf16>, vector<64x32xbf16>, vector<256x32xf32> -> vector<256x32xf32>
    %c0_67 = arith.constant 0 : index
    %c0_68 = arith.constant 0 : index
    %106 = vector.load %arg7[%c0_67, %c0_68] : memref<1x32xf32, #tpu.memory_space<vmem>>, vector<1x32xf32>
    %107 = vector.broadcast %106 : vector<1x32xf32> to vector<256x32xf32>
    %108 = arith.addf %105, %107 : vector<256x32xf32>
    %109 = vector.shape_cast %108 : vector<256x32xf32> to vector<1x256x32xf32>
    %cst_69 = arith.constant dense<0.000000e+00> : vector<1x32xf32>
    %110 = vector.multi_reduction <add>, %109, %cst_69 [1] : vector<1x256x32xf32> to vector<1x32xf32>
    %cst_70 = arith.constant 2.560000e+02 : f32
    %111 = vector.broadcast %cst_70 : f32 to vector<1x32xf32>
    %112 = arith.divf %110, %111 : vector<1x32xf32>
    %c0_71 = arith.constant 0 : index
    %c0_72 = arith.constant 0 : index
    %113 = vector.load %arg8[%c0_71, %c0_72] : memref<2x32xf32, #tpu.memory_space<vmem>>, vector<2x32xf32>
    %c0_73 = arith.constant 0 : index
    %c0_74 = arith.constant 0 : index
    %114 = vector.load %arg10[%c0_73, %c0_74] : memref<2x32xf32, #tpu.memory_space<vmem>>, vector<2x32xf32>
    %c0_75 = arith.constant 0 : index
    %c0_76 = arith.constant 0 : index
    %115 = vector.load %arg9[%c0_75, %c0_76] : memref<1x2xf32, #tpu.memory_space<vmem>>, vector<1x2xf32>
    %c0_77 = arith.constant 0 : index
    %c0_78 = arith.constant 0 : index
    %116 = vector.load %arg11[%c0_77, %c0_78] : memref<1x32xf32, #tpu.memory_space<vmem>>, vector<1x32xf32>
    %117 = vector.extract_strided_slice %113 {offsets = [0, 0], sizes = [1, 32], strides = [1, 1]} : vector<2x32xf32> to vector<1x32xf32>
    %118 = arith.mulf %112, %117 : vector<1x32xf32>
    %cst_79 = arith.constant dense<0.000000e+00> : vector<1xf32>
    %119 = vector.multi_reduction <add>, %118, %cst_79 [1] : vector<1x32xf32> to vector<1xf32>
    %120 = vector.shape_cast %119 : vector<1xf32> to vector<1x1xf32>
    %121 = vector.extract_strided_slice %115 {offsets = [0, 0], sizes = [1, 1], strides = [1, 1]} : vector<1x2xf32> to vector<1x1xf32>
    %122 = arith.addf %120, %121 : vector<1x1xf32>
    %cst_80 = arith.constant 0.000000e+00 : f32
    %123 = vector.broadcast %cst_80 : f32 to vector<1x1xf32>
    %124 = arith.maximumf %122, %123 : vector<1x1xf32>
    %125 = vector.extract_strided_slice %114 {offsets = [0, 0], sizes = [1, 32], strides = [1, 1]} : vector<2x32xf32> to vector<1x32xf32>
    %126 = vector.broadcast %124 : vector<1x1xf32> to vector<1x32xf32>
    %127 = arith.mulf %126, %125 : vector<1x32xf32>
    %128 = arith.addf %116, %127 : vector<1x32xf32>
    %129 = vector.extract_strided_slice %113 {offsets = [1, 0], sizes = [1, 32], strides = [1, 1]} : vector<2x32xf32> to vector<1x32xf32>
    %130 = arith.mulf %112, %129 : vector<1x32xf32>
    %cst_81 = arith.constant dense<0.000000e+00> : vector<1xf32>
    %131 = vector.multi_reduction <add>, %130, %cst_81 [1] : vector<1x32xf32> to vector<1xf32>
    %132 = vector.shape_cast %131 : vector<1xf32> to vector<1x1xf32>
    %133 = vector.extract_strided_slice %115 {offsets = [0, 1], sizes = [1, 1], strides = [1, 1]} : vector<1x2xf32> to vector<1x1xf32>
    %134 = arith.addf %132, %133 : vector<1x1xf32>
    %cst_82 = arith.constant 0.000000e+00 : f32
    %135 = vector.broadcast %cst_82 : f32 to vector<1x1xf32>
    %136 = arith.maximumf %134, %135 : vector<1x1xf32>
    %137 = vector.extract_strided_slice %114 {offsets = [1, 0], sizes = [1, 32], strides = [1, 1]} : vector<2x32xf32> to vector<1x32xf32>
    %138 = vector.broadcast %136 : vector<1x1xf32> to vector<1x32xf32>
    %139 = arith.mulf %138, %137 : vector<1x32xf32>
    %140 = arith.addf %128, %139 : vector<1x32xf32>
    %141 = arith.negf %140 : vector<1x32xf32>
    %142 = math.exp %141 : vector<1x32xf32>
    %cst_83 = arith.constant 1.000000e+00 : f32
    %143 = vector.broadcast %cst_83 : f32 to vector<1x32xf32>
    %144 = arith.addf %143, %142 : vector<1x32xf32>
    %145 = arith.divf %143, %144 : vector<1x32xf32>
    %146 = vector.shape_cast %145 : vector<1x32xf32> to vector<1x1x32xf32>
    %147 = vector.broadcast %146 : vector<1x1x32xf32> to vector<1x256x32xf32>
    %148 = arith.mulf %109, %147 : vector<1x256x32xf32>
    %149 = vector.shape_cast %0 : vector<1x16x16x32xbf16> to vector<1x256x32xbf16>
    %150 = arith.extf %149 : vector<1x256x32xbf16> to vector<1x256x32xf32>
    %151 = arith.addf %148, %150 : vector<1x256x32xf32>
    %152 = vector.shape_cast %151 : vector<1x256x32xf32> to vector<1x16x16x32xf32>
    %c0_84 = arith.constant 0 : index
    %c0_85 = arith.constant 0 : index
    %c0_86 = arith.constant 0 : index
    %c0_87 = arith.constant 0 : index
    %153 = vector.load %arg12[%c0_84, %c0_85, %c0_86, %c0_87] : memref<1x16x16x32xf32, #tpu.memory_space<vmem>>, vector<1x16x16x32xf32>
    tpu.vector_store %arg12[%c0_84, %c0_85, %c0_86, %c0_87], %152 {strides = array<i32>} : memref<1x16x16x32xf32, #tpu.memory_space<vmem>>, vector<1x16x16x32xf32>,
    return
  }
  func.func @transform_0(%arg0: i32) -> (i32, i32, i32, i32) {
    %c0_i32 = arith.constant 0 : i32
    %c0_i32_0 = arith.constant 0 : i32
    %c0_i32_1 = arith.constant 0 : i32
    %c0_i32_2 = arith.constant 0 : i32
    return %arg0, %c0_i32, %c0_i32_0, %c0_i32_1 : i32, i32, i32, i32
  }
  func.func @transform_1(%arg0: i32) -> (i32, i32) {
    %c0_i32 = arith.constant 0 : i32
    %c0_i32_0 = arith.constant 0 : i32
    %c0_i32_1 = arith.constant 0 : i32
    return %c0_i32, %c0_i32_0 : i32, i32
  }
  func.func @transform_2(%arg0: i32) -> (i32, i32) {
    %c0_i32 = arith.constant 0 : i32
    %c0_i32_0 = arith.constant 0 : i32
    %c0_i32_1 = arith.constant 0 : i32
    return %c0_i32, %c0_i32_0 : i32, i32
  }
  func.func @transform_3(%arg0: i32) -> (i32, i32) {
    %c0_i32 = arith.constant 0 : i32
    %c0_i32_0 = arith.constant 0 : i32
    %c0_i32_1 = arith.constant 0 : i32
    return %c0_i32, %c0_i32_0 : i32, i32
  }
  func.func @transform_4(%arg0: i32) -> (i32, i32) {
    %c0_i32 = arith.constant 0 : i32
    %c0_i32_0 = arith.constant 0 : i32
    %c0_i32_1 = arith.constant 0 : i32
    return %c0_i32, %c0_i32_0 : i32, i32
  }
  func.func @transform_5(%arg0: i32) -> (i32, i32) {
    %c0_i32 = arith.constant 0 : i32
    %c0_i32_0 = arith.constant 0 : i32
    %c0_i32_1 = arith.constant 0 : i32
    return %c0_i32, %c0_i32_0 : i32, i32
  }
  func.func @transform_6(%arg0: i32) -> (i32, i32) {
    %c0_i32 = arith.constant 0 : i32
    %c0_i32_0 = arith.constant 0 : i32
    %c0_i32_1 = arith.constant 0 : i32
    return %c0_i32, %c0_i32_0 : i32, i32
  }
  func.func @transform_7(%arg0: i32) -> (i32, i32) {
    %c0_i32 = arith.constant 0 : i32
    %c0_i32_0 = arith.constant 0 : i32
    %c0_i32_1 = arith.constant 0 : i32
    return %c0_i32, %c0_i32_0 : i32, i32
  }
  func.func @transform_8(%arg0: i32) -> (i32, i32) {
    %c0_i32 = arith.constant 0 : i32
    %c0_i32_0 = arith.constant 0 : i32
    %c0_i32_1 = arith.constant 0 : i32
    return %c0_i32, %c0_i32_0 : i32, i32
  }
  func.func @transform_9(%arg0: i32) -> (i32, i32) {
    %c0_i32 = arith.constant 0 : i32
    %c0_i32_0 = arith.constant 0 : i32
    %c0_i32_1 = arith.constant 0 : i32
    return %c0_i32, %c0_i32_0 : i32, i32
  }
  func.func @transform_10(%arg0: i32) -> (i32, i32) {
    %c0_i32 = arith.constant 0 : i32
    %c0_i32_0 = arith.constant 0 : i32
    %c0_i32_1 = arith.constant 0 : i32
    return %c0_i32, %c0_i32_0 : i32, i32
  }
  func.func @transform_11(%arg0: i32) -> (i32, i32, i32, i32) {
    %c0_i32 = arith.constant 0 : i32
    %c0_i32_0 = arith.constant 0 : i32
    %c0_i32_1 = arith.constant 0 : i32
    %c0_i32_2 = arith.constant 0 : i32
    return %arg0, %c0_i32, %c0_i32_0, %c0_i32_1 : i32, i32, i32, i32
  }
}

</mosaic_0001>

<bundles_post_ra>
// kernel: tpu_custom_call.1
= control target key start
LH: loop header
LB: loop body
LE: loop exit
PB: predicated region body
PF: predicated region fallthrough
CT: control target
= control target key end

     0   :  { %16 = vsyncpa [#allocation4], 0  ;;  %s4224_s0 = inlined_call_operand.hbm [shape: bf16[2,16,16,32], index: 0, kind: input, shape index: {}]   ;;  %s4225_s1 = inlined_call_operand.vmem [shape: bf16[32,64], index: 1, kind: input, shape index: {}]   ;;  %s4226_s2 = inlined_call_operand.vmem [shape: f32[1,64], index: 2, kind: input, shape index: {}]   ;;  %s4227_s3 = inlined_call_operand.vmem [shape: f32[9,64], index: 3, kind: input, shape index: {}]   ;;  %s4228_s4 = inlined_call_operand.vmem [shape: f32[1,64], index: 4, kind: input, shape index: {}]   ;;  %s4229_s5 = inlined_call_operand.vmem [shape: bf16[64,32], index: 5, kind: input, shape index: {}]   ;;  %s4230_s6 = inlined_call_operand.vmem [shape: f32[1,32], index: 6, kind: input, shape index: {}]   ;;  %s4231_s7 = inlined_call_operand.vmem [shape: f32[2,32], index: 7, kind: input, shape index: {}]   ;;  %s4232_s8 = inlined_call_operand.vmem [shape: f32[1,2], index: 8, kind: input, shape index: {}]   ;;  %s4233_s9 = inlined_call_operand.vmem [shape: f32[2,32], index: 9, kind: input, shape index: {}]   ;;  %s4234_s10 = inlined_call_operand.vmem [shape: f32[1,32], index: 10, kind: input, shape index: {}]   ;;  %s4235_s11 = inlined_call_operand.hbm [shape: f32[2,16,16,32], index: 11, kind: output, shape index: {}]  }
   0x1   :  { %18 = vsyncpa [#allocation4 + $0x1], 0 }
   0x2   :  { %19 = vsyncpa [#allocation5], 0 }
   0x3   :  { %21 = vsyncpa [#allocation5 + $0x1], 0  ;;  %s2690_s17 = smov 0   ;;  %s2692_s18 = smov 0  }
   0x4   :  { %s2694_s19 = smov 0   ;;  %s2696_s20 = smov 0  }
   0x5 LB: > { %4241 = sst [smem:[#allocation9_spill]] %s2608_s17  ;;  %s2711_s21 = sadd.s32 4294967295, %s2620_s20   ;;  %s2620_s20 = sphi %s2696_s20, %s4254_s20   ;;  %s2616_s19 = sphi %s2694_s19, %s4256_s19   ;;  %s2612_s18 = sphi %s2692_s18, %s4258_s18   ;;  %s2608_s17 = sphi %s2690_s17, %s4257_s17  }
   0x6   : > { %4242 = sst [smem:[#allocation10_spill]] %s2616_s19  ;;  %s2288_s22 = sadd.s32 4294967294, %s2620_s20  }
   0x7   : > { %s2715_s23 = sadd.s32 1, %s2620_s20   ;;  %s34_s24 = sadd.s32 1, %s2616_s19 }
   0x8   : > { %4243 = sst [smem:[#allocation11_spill]] %s2715_s23  ;;  %s31_s25 = ssub.s32 %s2620_s20, %s2715_s23 }
   0x9   : > { %p41_p0 = scmp.ne.s32.totalorder %s2616_s19, %s2612_s18  ;;  %p32_p1 = scmp.eq.s32.totalorder %s31_s25, 0 }
   0xa   : > { %p42_p2 = scmp.eq.s32.totalorder %s2620_s20, 0  ;;  %p47_p3 = scmp.ne.s32.totalorder %s2612_s18, %s2608_s17 }
   0xb   : > { %p48_p4 = scmp.eq.s32.totalorder %s2711_s21, 0  ;;  %p281_p7 = scmp.eq.s32.totalorder %s2711_s21, 1 }
   0xc   : > { %s2727_s26 = scalar_select %p32_p1, %s2616_s19, %s34_s24  }
   0xd   : > { %p2729_p5 = por %p42_p2, %p41_p0  ;;  %p2733_p6 = por %p48_p4, %p47_p3 }
   0xe   : > { %4244 = sst [smem:[#allocation12_spill]] %s2727_s26  ;;  %p287_p8 = scmp.eq.s32.totalorder %s2288_s22, 1 }
   0xf   : > { %p2465_p10 = scmp.lt.s32.totalorder %s2620_s20, 2  ;;  %p2740_p11 = por %p281_p7, %p41_p0 }
  0x10   : > { %p2744_p12 = por %p287_p8, %p47_p3  ;;  %s337_s12 = sand.u32 1, %s2616_s19  }
  0x11   : > { %s2423_s13 = sshll.u32 %s2620_s20, 7  ;;  %s2291_s14 = sshll.u32 %s337_s12, 7 }
  0x12   : > { %s4248_s30 = scalar_select %p2744_p12, 1, 0 }
  0x13   : > { %s346_s24 = scalar_lea.hbm %s4224_s0, %s2423_s13  ;;  %s341_s22 = scalar_lea.vmem [#allocation3], %s2291_s14 }
  0x14   : > { %4249 = sst [smem:[#allocation13_spill]] %s4248_s30  ;;  %s347_s25 = sshll.u32 %s346_s24, 4  ;;  %s348_s25 = int_to_ptr.hbm [resolvable:$true] %s347_s25 }
  0x15   : > { %s349_s26 = sshll.u32 %s341_s22, 4  ;;  %p2755_p13 = pnand %p2465_p10, %p2729_p5  ;;  %s350_s26 = int_to_ptr.vmem [resolvable:$true] %s349_s26 }
  0x16   : > { %p2294_p0 = scmp.ge.s32.totalorder %s2620_s20, 1  ;;  %p357_p1 = scmp.lt.s32.totalorder %s2620_s20, 3 }
  0x17   : > { %s338_s19 = scalar_lea.sflag [#allocation4], %s337_s12  ;;  %s2524_s30 = sshra.s32 %s348_s25, 4  ;;  %s2525_s30 = int_to_ptr.hbm [resolvable:$true] %s2524_s30 }
  0x18   : > { %s2526_s17 = scalar_lea.hbm %s2525_s30, 128  ;;  %p2528_p3 = pneg %p2755_p13 }
  0x19   : > { %p2527_p2 = scmp.ne.s32.totalorder %s2525_s30, %s2526_s17  ;;  %s2531_s27 = scalar_lea.hbm %s4224_s0, 256 }
  0x1a   : > { %p2532_p5 = scmp.lt.s32.totalorder %s2525_s30, %s4224_s0  ;;  %p2533_p8 = scmp.lt.s32.totalorder %s2531_s27, %s2526_s17 }
  0x1b   : > { %p2529_p4 = pnand %p2528_p3, %p2527_p2 }
  0x1c   : > { %p2534_p10 = por %p2533_p8, %p2532_p5 }
  0x1d   : > { %p2530_p7 = pneg %p2529_p4 }
  0x1f   : > { %p2535_p9 = pnand %p2534_p10, %p2530_p7 }
  0x21   : > { %2538 = shalt.err (!%p2535_p9)
}
  0x22   : > { %s2622_s12 = smov 64   ;;  %s2623_s24 = smov 4  }
  0x23   : > { %2460 = dma.hbm_to_vmem [thread:$0]  (!%p2755_p13), %s348_s25, 2048, %s350_s26, %s338_s19, %s2622_s12, %s2622_s12, %s2623_s24  }
  0x24   : > { %p358_p2 = pnand %p2294_p0, %p357_p1 }
  0x25   : > { %s2776_s22 = sand.u32 (!%p358_p2), 1, %s2612_s18  }
  0x26   : > { %361 = sbr.rel (%p358_p2) target bundleno = 962 (0x3c2), region = 64  ;;  %s2295_s17 = sshll.u32 (!%p358_p2), %s2776_s22, 7 }
  0x27   : > { %s364_s30 = scalar_lea.sflag (!%p358_p2), [#allocation4], %s2776_s22  ;;  %s2780_s13 = scalar_lea.vmem (!%p358_p2), [#allocation3], %s2295_s17 }
  0x2b   : > { %2599 = dma.done.wait (%p2733_p6), %s364_s30, 2048  }
  0x2c   : > { %2601 = vsyncadd (%p2733_p6), %s364_s30, 4294965248  ;;  %v2441_v0 = vld [vmem:[%s4225_s1 + $0x8] sm:$0xff]  ;;  %v2440_v1 = vld [vmem:[%s4225_s1] sm:$0xff]  ;;  %vm540_vm0 = vcmask 261120   ;;  %vm742_vm1 = vcmask 523264   ;;  %v2624_v13 = vmov 0.0   ;;  %v784_v38 = vlaneseq }
  0x2d   : > { %595 = vmatpush.bf16.msra.mxu0 %v2441_v0  ;;  %2447 = vmatpush.bf16.msra.mxu3 %v2441_v0  ;;  %v2424_v2 = vld [vmem:[%s2780_s13] sm:$0xff]  ;;  %v2425_v3 = vld [vmem:[%s2780_s13 + $0x8] sm:$0xff]  ;;  %v2426_v4 = vld [vmem:[%s2780_s13 + $0x10] sm:$0xff]  ;;  %743 = vst.msk [vmem:[#allocation2] sm:$0xff] %vm742_vm1, %v2624_v13  ;;  %vm2026_vm7 = vcmask 254977   ;;  %vm2013_vm8 = vcmask 253952  }
  0x2e   : > { %v2427_v5 = vld [vmem:[%s2780_s13 + $0x18] sm:$0xff]  ;;  %v2433_v6 = vld [vmem:[%s2780_s13 + $0x48] sm:$0xff]  ;;  %v2428_v7 = vld [vmem:[%s2780_s13 + $0x20] sm:$0xff]  ;;  %744 = vst.msk [vmem:[#allocation2 + $0x8] sm:$0xff] %vm742_vm1, %v2624_v13  ;;  %v2859_v43 = vshrl.u32 %v784_v38, 7  ;;  %s2626_s27 = smov 127  }
  0x2f   : > { %v2434_v8 = vld [vmem:[%s2780_s13 + $0x50] sm:$0xff]  ;;  %v2429_v9 = vld [vmem:[%s2780_s13 + $0x28] sm:$0xff]  ;;  %v2435_v10 = vld [vmem:[%s2780_s13 + $0x58] sm:$0xff]  ;;  %746 = vst.msk [vmem:[#allocation2 + $0x110] sm:$0xff] %vm742_vm1, %v2624_v13  ;;  %s2296_s19 = sshll.u32 %s2776_s22, 8  ;;  %s2446_s26 = sshll.u32 %s2711_s21, 8 }
  0x30   : > { %v2430_v11 = vld [vmem:[%s2780_s13 + $0x30] sm:$0xff]  ;;  %v2436_v12 = vld [vmem:[%s2780_s13 + $0x60] sm:$0xff]  ;;  %747 = vst.msk [vmem:[#allocation2 + $0x118] sm:$0xff] %vm742_vm1, %v2624_v13  ;;  %v2431_v14 = vld [vmem:[%s2780_s13 + $0x38] sm:$0xff]  ;;  %v2875_v57 = vadd.s32 8, %v2859_v43  ;;  %vm1246_vm2 = vcmp.lt.s32.totalorder %v2859_v43, 1  ;;  %s2211_s25 = scalar_lea.hbm %s4235_s11, %s2446_s26 }
  0x31   : > { %596 = vmatpush.bf16.msra.mxu0 %v2440_v1  ;;  %2448 = vmatpush.bf16.msra.mxu3 %v2440_v1  ;;  %v2437_v15 = vld [vmem:[%s2780_s13 + $0x68] sm:$0xff]  ;;  %v2825_v16 = vld [vmem:[%s4226_s2] ss:$0 sm:$0xff]  ;;  %v2432_v17 = vld [vmem:[%s2780_s13 + $0x40] sm:$0xff]  ;;  %vm787_vm3 = vcmp.ne.s32.totalorder %v2859_v43, 0  ;;  %vm1542_vm4 = vcmp.lt.s32.totalorder %v2859_v43, 7 }
  0x32   : > { %v2438_v21 = vld [vmem:[%s2780_s13 + $0x70] sm:$0xff]  ;;  %v2444_v28 = vld [vmem:[%s4229_s5 + $0x10] sm:$0xff]  ;;  %v2443_v31 = vld [vmem:[%s4229_s5 + $0x8] sm:$0xff]  ;;  %vm790_vm5 = vcmp.ne.s32.totalorder %v2875_v57, 15  ;;  %s4068_s23 = scalar_lea.vmem [#allocation6], %s2296_s19  ;;  %s2214_s14 = sshll.u32 %s2211_s25, 4  ;;  %s2215_s14 = int_to_ptr.hbm [resolvable:$true] %s2214_s14 }
  0x33   : > { %v2445_v25 = vld [vmem:[%s4229_s5 + $0x18] sm:$0xff]  ;;  %v2439_v33 = vld [vmem:[%s2780_s13 + $0x78] sm:$0xff]  ;;  %v2885_v62 = vld [vmem:[%s4227_s3 + $0x8] ss:$0 sm:$0xff]  ;;  %s2212_s28 = sshll.u32 %s4068_s23, 4  ;;  %s2568_s15 = sshra.s32 %s2215_s14, 4  ;;  %s2213_s28 = int_to_ptr.vmem [resolvable:$true] %s2212_s28  ;;  %s2569_s15 = int_to_ptr.hbm [resolvable:$true] %s2568_s15 }
  0x34   : > { %2369 = vmatmul.msk.bf16.vlgmr.msra.gmra.mxu0 %vm540_vm0, %v2424_v2  ;;  %2378 = vmatmul.msk.bf16.vlgmr.msra.gmra.mxu3 %vm540_vm0, %v2433_v6  ;;  %v2442_v35 = vld [vmem:[%s4229_s5] sm:$0xff]  ;;  %v791_v44 = vld [vmem:[#allocation2] sm:$0xff]  ;;  %s2570_s16 = scalar_lea.hbm %s2569_s15, 256  ;;  %s2574_s17 = scalar_lea.hbm %s4235_s11, 512 }
  0x35   : > { %1846 = vmatpush.bf16.msra.mxu1 %v2445_v25  ;;  %2449 = vmatpush.bf16.msra.mxu2 %v2445_v25  ;;  %v781_v37 = vld [vmem:[%s4227_s3] sm:$0xff]  ;;  %v792_v48 = vld [vmem:[#allocation2 + $0x8] sm:$0xff]  ;;  %p2571_p6 = scmp.ne.s32.totalorder %s2569_s15, %s2570_s16  ;;  %p2575_p0 = scmp.lt.s32.totalorder %s2569_s15, %s4235_s11 }
  0x36   : > { %v2855_v41 = vperm.slane %v781_v37, 1  ;;  %v2857_v42 = vperm.slane %v781_v37, 0  ;;  %v2861_v45 = vperm.slane %v781_v37, 4  ;;  %v2863_v46 = vperm.slane %v781_v37, 2  ;;  %p2576_p1 = scmp.lt.s32.totalorder %s2574_s17, %s2570_s16 }
  0x37   : > { %v2865_v50 = vperm.slane %v781_v37, 3  ;;  %v2867_v51 = vperm.slane %v781_v37, 5  ;;  %v2872_v55 = vperm.slane %v781_v37, 6  ;;  %p2572_p9 = pnand %p2571_p6, %p2740_p11 }
  0x38   : > { %v824_v52 = vmul.f32 %v2855_v41, %v791_v44  ;;  %v1052_v54 = vmul.f32 %v2857_v42, %v791_v44  ;;  %v825_v58 = vmul.f32 %v2855_v41, %v792_v48  ;;  %v1348_v61 = vmul.f32 %v2863_v46, %v791_v44  ;;  %p2577_p3 = por %p2576_p1, %p2575_p0 }
  0x39   : > { %1847 = vmatpush.bf16.msra.mxu1 %v2444_v28  ;;  %2450 = vmatpush.bf16.msra.mxu2 %v2444_v28  ;;  %v1053_v0 = vmul.f32 %v2857_v42, %v792_v48  ;;  %p2573_p13 = pneg %p2572_p9 }
  0x3b   : > { %p2578_p4 = pnand %p2577_p3, %p2573_p13 }
  0x3d   : > { %1848 = vmatpush.bf16.msra.mxu1 %v2443_v31  ;;  %2451 = vmatpush.bf16.msra.mxu2 %v2443_v31 }
  0x41   : > { %1849 = vmatpush.bf16.msra.mxu1 %v2442_v35  ;;  %2452 = vmatpush.bf16.msra.mxu2 %v2442_v35 }
  0x44   : > { %2370 = vmatmul.msk.bf16.gmra.mxu0 %vm540_vm0, %v2425_v3  ;;  %2379 = vmatmul.msk.bf16.gmra.mxu3 %vm540_vm0, %v2434_v8  ;;  %v2891_v3 = vperm.slane %v781_v37, 7 }
  0x54   : > { %2371 = vmatmul.msk.bf16.gmra.mxu0 %vm540_vm0, %v2426_v4  ;;  %2380 = vmatmul.msk.bf16.gmra.mxu3 %vm540_vm0, %v2435_v10 }
  0x64   : > { %2372 = vmatmul.msk.bf16.gmra.mxu0 %vm540_vm0, %v2427_v5  ;;  %2381 = vmatmul.msk.bf16.gmra.mxu3 %vm540_vm0, %v2436_v12  ;;  %v1349_v5 = vmul.f32 %v2863_v46, %v792_v48 }
  0x74   : > { %2373 = vmatmul.msk.bf16.gmra.mxu0 %vm540_vm0, %v2428_v7  ;;  %2382 = vmatmul.msk.bf16.gmra.mxu3 %vm540_vm0, %v2437_v15 }
  0x84   : > { %2374 = vmatmul.msk.bf16.gmra.mxu0 %vm540_vm0, %v2429_v9  ;;  %2383 = vmatmul.msk.bf16.gmra.mxu3 %vm540_vm0, %v2438_v21 }
  0x94   : > { %2375 = vmatmul.msk.bf16.gmra.mxu0 %vm540_vm0, %v2430_v11  ;;  %2384 = vmatmul.msk.bf16.gmra.mxu3 %vm540_vm0, %v2439_v33 }
  0xa4   : > { %2376 = vmatmul.msk.bf16.gmra.mxu0 %vm540_vm0, %v2431_v14 }
  0xb1   : > { %v598_v18 = vpop.f32.mrf.mxu0 }
  0xb2   : > { %v599_v19 = vadd.f32 %v2825_v16, %v598_v18 }
  0xb4   : > { %v678_v20 = vmax.f32 %v599_v19, 0.0  ;;  %2377 = vmatmul.msk.bf16.gmra.mxu0 %vm540_vm0, %v2432_v17 }
  0xb6   : > { %v710_v22 = vmin.f32 %v678_v20, 6.0 }
  0xb8   : > { %749 = vst.msk [vmem:[#allocation2 + $0x10] sm:$0xff] %vm742_vm1, %v710_v22 }
  0xb9   : > { %v600_v23 = vpop.f32.mrf.mxu0 }
  0xba   : > { %v601_v24 = vadd.f32 %v2825_v16, %v600_v23 }
  0xbc   : > { %v679_v26 = vmax.f32 %v601_v24, 0.0 }
  0xbe   : > { %v711_v27 = vmin.f32 %v679_v26, 6.0 }
  0xbf   : > { %v856_v49 = vld [vmem:[#allocation2 + $0x10] sm:$0xff] }
  0xc0   : > { %750 = vst.msk [vmem:[#allocation2 + $0x18] sm:$0xff] %vm742_vm1, %v711_v27  ;;  %v889_v59 = vmul.f32 %v2861_v45, %v856_v49  ;;  %v1085_v1 = vmul.f32 %v2865_v50, %v856_v49  ;;  %v1381_v2 = vmul.f32 %v2867_v51, %v856_v49  ;;  %v826_v9 = vmul.f32 %v856_v49, %v2855_v41 }
  0xc1   : > { %v603_v29 = vpop.f32.mrf.mxu0  ;;  %v1054_v12 = vmul.f32 %v2857_v42, %v856_v49  ;;  %v1350_v13 = vmul.f32 %v2863_v46, %v856_v49 }
  0xc2   : > { %v604_v30 = vadd.f32 %v2825_v16, %v603_v29  ;;  %v921_v10 = vadd.f32 %v889_v59, %v824_v52  ;;  %v1117_v17 = vadd.f32 %v1085_v1, %v1052_v54  ;;  %v1413_v18 = vadd.f32 %v1381_v2, %v1348_v61 }
  0xc4   : > { %v680_v32 = vmax.f32 %v604_v30, 0.0 }
  0xc6   : > { %v712_v34 = vmin.f32 %v680_v32, 6.0 }
  0xc7   : > { %v857_v53 = vld [vmem:[#allocation2 + $0x18] sm:$0xff] }
  0xc8   : > { %751 = vst.msk [vmem:[#allocation2 + $0x20] sm:$0xff] %vm742_vm1, %v712_v34  ;;  %v1086_v4 = vmul.f32 %v2865_v50, %v857_v53  ;;  %v1382_v8 = vmul.f32 %v2867_v51, %v857_v53  ;;  %v890_v15 = vmul.f32 %v2861_v45, %v857_v53  ;;  %v827_v21 = vmul.f32 %v857_v53, %v2855_v41 }
  0xc9   : > { %v605_v36 = vpop.f32.mrf.mxu0  ;;  %v2912_v22 = vmul.f32 %v2857_v42, %v857_v53  ;;  %v2915_v23 = vmul.f32 %v2863_v46, %v857_v53 }
  0xca   : > { %v606_v39 = vadd.f32 %v2825_v16, %v605_v36  ;;  %v1118_v20 = vadd.f32 %v1086_v4, %v1053_v0  ;;  %v1414_v26 = vadd.f32 %v1382_v8, %v1349_v5  ;;  %v922_v37 = vadd.f32 %v890_v15, %v825_v58  ;;  %v2950_v4 = vld [vmem:[%s4228_s4] ss:$0 sm:$0xff] }
  0xcc   : > { %v681_v40 = vmax.f32 %v606_v39, 0.0 }
  0xce   : > { %v713_v47 = vmin.f32 %v681_v40, 6.0 }
  0xcf   : > { %v2879_v60 = vld [vmem:[#allocation2 + $0x20] sm:$0xff] }
  0xd0   : > { %752 = vst.msk [vmem:[#allocation2 + $0x28] sm:$0xff] %vm742_vm1, %v713_v47  ;;  %v1150_v7 = vmul.f32 %v2872_v55, %v2879_v60  ;;  %v1446_v11 = vmul.f32 %v2885_v62, %v2879_v60  ;;  %v987_v29 = vmul.f32 %v2891_v3, %v2879_v60  ;;  %v891_v32 = vmul.f32 %v2879_v60, %v2861_v45 }
  0xd1   : > { %v608_v56 = vpop.f32.mrf.mxu0  ;;  %v1087_v36 = vmul.f32 %v2865_v50, %v2879_v60  ;;  %v1383_v38 = vmul.f32 %v2867_v51, %v2879_v60  ;;  %v828_v39 = vmul.f32 %v2879_v60, %v2855_v41  ;;  %v2937_v40 = vmul.f32 %v2857_v42, %v2879_v60 }
  0xd2   : > { %v609_v63 = vadd.f32 %v2825_v16, %v608_v56  ;;  %v1182_v25 = vadd.f32 %v1150_v7, %v1117_v17  ;;  %v1478_v31 = vadd.f32 %v1446_v11, %v1413_v18  ;;  %v1019_v52 = vadd.f32 %v987_v29, %v921_v10 }
  0xd3   : > { %v923_v56 = vadd.f32 %v891_v32, %v826_v9  ;;  %v1352_v10 = vmul.f32 %v2863_v46, %v2879_v60 }
  0xd4   : > { %v682_v6 = vmax.f32 %v609_v63, 0.0  ;;  %v1214_v47 = vrot.slane %v1182_v25, 7  ;;  %v1510_v54 = vrot.slane %v1478_v31, 1  ;;  %v1119_v63 = vadd.f32 %v1087_v36, %v1054_v12 }
  0xd6   : > { %v714_v14 = vmin.f32 %v682_v6, 6.0  ;;  %v1415_v6 = vadd.f32 %v1383_v38, %v1350_v13 }
  0xd7   : > { %v2908_v19 = vld [vmem:[#allocation2 + $0x28] sm:$0xff] }
  0xd8   : > { %753 = vst.msk [vmem:[#allocation2 + $0x30] sm:$0xff] %vm742_vm1, %v714_v14  ;;  %v1151_v24 = vmul.f32 %v2872_v55, %v2908_v19  ;;  %v1447_v27 = vmul.f32 %v2885_v62, %v2908_v19  ;;  %v988_v30 = vmul.f32 %v2891_v3, %v2908_v19  ;;  %v892_v9 = vmul.f32 %v2908_v19, %v2861_v45 }
  0xd9   : > { %v610_v28 = vpop.f32.mrf.mxu0  ;;  %v1057_v31 = vmul.f32 %v2857_v42, %v2908_v19 }
  0xda   : > { %v611_v33 = vadd.f32 %v2825_v16, %v610_v28  ;;  %v1183_v34 = vadd.f32 %v1151_v24, %v1118_v20  ;;  %v1479_v35 = vadd.f32 %v1447_v27, %v1414_v26  ;;  %v1020_v53 = vadd.f32 %v988_v30, %v922_v37 }
  0xdb   : > { %v1088_v20 = vmul.f32 %v2865_v50, %v2908_v19  ;;  %v1384_v24 = vmul.f32 %v2867_v51, %v2908_v19  ;;  %v829_v26 = vmul.f32 %v2908_v19, %v2855_v41  ;;  %v924_v30 = vadd.f32 %v892_v9, %v827_v21 }
  0xdc   : > { %v683_v44 = vmax.f32 %v611_v33, 0.0  ;;  %v1230_v48 = vrot.slane %v1183_v34, 7  ;;  %v1526_v49 = vrot.slane %v1479_v35, 1  ;;  %v1353_v21 = vmul.f32 %v2863_v46, %v2908_v19 }
  0xdd   : > { %v1120_v38 = vadd.f32 %v1088_v20, %v2912_v22 }
  0xde   : > { %v715_v59 = vmin.f32 %v683_v44, 6.0  ;;  %v1247_v58 = vsel %vm1246_vm2, %v1214_v47, %v1230_v48  ;;  %v1263_v61 = vsel %vm1246_vm2, %v1230_v48, %v1214_v47  ;;  %v1559_v2 = vsel %vm1542_vm4, %v1526_v49, %v1510_v54 }
  0xdf   : > { %v1283_v0 = vsel %vm787_vm3, %v1263_v61, 0.0  ;;  %v1316_v1 = vadd.f32 %v1247_v58, %v1020_v53  ;;  %v956_v5 = vld [vmem:[#allocation2 + $0x30] sm:$0xff]  ;;  %v1580_v8 = vsel %vm790_vm5, %v1559_v2, 0.0  ;;  %v1543_v12 = vsel %vm1542_vm4, %v1510_v54, %v1526_v49 }
  0xe0   : > { %754 = vst.msk [vmem:[#allocation2 + $0x38] sm:$0xff] %vm742_vm1, %v715_v59  ;;  %v1315_v7 = vadd.f32 %v1283_v0, %v1019_v52  ;;  %v1152_v15 = vmul.f32 %v2872_v55, %v956_v5  ;;  %v1448_v13 = vmul.f32 %v2885_v62, %v956_v5  ;;  %v989_v25 = vmul.f32 %v2891_v3, %v956_v5 }
  0xe1   : > { %v613_v11 = vpop.f32.mrf.mxu0  ;;  %v1612_v14 = vadd.f32 %v1580_v8, %v1316_v1  ;;  %v893_v27 = vmul.f32 %v956_v5, %v2861_v45  ;;  %v1089_v35 = vmul.f32 %v2865_v50, %v956_v5  ;;  %v1416_v44 = vadd.f32 %v1384_v24, %v2915_v23 }
  0xe2   : > { %v614_v17 = vadd.f32 %v2825_v16, %v613_v11  ;;  %v1611_v18 = vadd.f32 %v1543_v12, %v1315_v7  ;;  %v1184_v33 = vadd.f32 %v1152_v15, %v1119_v63  ;;  %v1480_v34 = vadd.f32 %v1448_v13, %v1415_v6  ;;  %v643_v6 = vpop.f32.mrf.mxu3 }
  0xe3   : > { %v1647_v60 = vadd.f32 %v2950_v4, %v1612_v14  ;;  %v1021_v49 = vadd.f32 %v989_v25, %v923_v56  ;;  %v925_v52 = vadd.f32 %v893_v27, %v828_v39  ;;  %v1385_v22 = vmul.f32 %v2867_v51, %v956_v5 }
  0xe4   : > { %v684_v28 = vmax.f32 %v614_v17, 0.0  ;;  %v1646_v29 = vadd.f32 %v2950_v4, %v1611_v18  ;;  %v1215_v56 = vrot.slane %v1184_v33, 7  ;;  %v1511_v39 = vrot.slane %v1480_v34, 1 }
  0xe5   : > { %v1679_v32 = vmax.f32 %v1647_v60, 0.0  ;;  %v1121_v61 = vadd.f32 %v1089_v35, %v2937_v40  ;;  %v830_v8 = vmul.f32 %v956_v5, %v2855_v41  ;;  %v1058_v9 = vmul.f32 %v2857_v42, %v956_v5 }
  0xe6   : > { %v716_v36 = vmin.f32 %v684_v28, 6.0  ;;  %v1678_v37 = vmax.f32 %v1646_v29, 0.0  ;;  %v1417_v12 = vadd.f32 %v1385_v22, %v1352_v10  ;;  %v3001_v14 = vmul.f32 %v2863_v46, %v956_v5 }
  0xe7   : > { %v1711_v47 = vmin.f32 %v1679_v32, 6.0  ;;  %v2979_v48 = vld [vmem:[#allocation2 + $0x38] sm:$0xff] }
  0xe8   : > { %755 = vst.msk [vmem:[#allocation2 + $0x40] sm:$0xff] %vm742_vm1, %v716_v36  ;;  %v1710_v53 = vmin.f32 %v1678_v37, 6.0  ;;  %v1153_v54 = vmul.f32 %v2872_v55, %v2979_v48  ;;  %v1449_v59 = vmul.f32 %v2885_v62, %v2979_v48  ;;  %v990_v58 = vmul.f32 %v2891_v3, %v2979_v48 }
  0xe9   : > { %v615_v23 = vpop.f32.mrf.mxu0  ;;  %v894_v1 = vmul.f32 %v2979_v48, %v2861_v45  ;;  %v1090_v7 = vmul.f32 %v2865_v50, %v2979_v48  ;;  %v1386_v17 = vmul.f32 %v2867_v51, %v2979_v48  ;;  %v3007_v18 = vmul.f32 %v2979_v48, %v2855_v41 }
  0xea   : > { %v616_v19 = vadd.f32 %v2825_v16, %v615_v23  ;;  %v1742_v63 = vpack.c.bf16 %v1711_v47, %v1710_v53  ;;  %v1185_v0 = vadd.f32 %v1153_v54, %v1120_v38  ;;  %v1481_v2 = vadd.f32 %v1449_v59, %v1416_v44 }
  0xeb   : > { %v1022_v15 = vadd.f32 %v990_v58, %v924_v30  ;;  %v3013_v10 = vadd.f32 %v894_v1, %v829_v26  ;;  %v1122_v29 = vadd.f32 %v1090_v7, %v1057_v31  ;;  %v644_v26 = vadd.f32 %v2825_v16, %v643_v6 }
  0xec   : > { %v685_v11 = vmax.f32 %v616_v19, 0.0  ;;  %2401 = vmatmul.msk.bf16.vlgmr.msra.gmra.mxu1 %vm742_vm1, %v1742_v63  ;;  %v1231_v40 = vrot.slane %v1185_v0, 7  ;;  %v1527_v13 = vrot.slane %v1481_v2, 1  ;;  %v1418_v59 = vadd.f32 %v1386_v17, %v1353_v21  ;;  %v645_v0 = vpop.f32.mrf.mxu3 }
  0xed   : > { %v696_v47 = vmax.f32 %v644_v26, 0.0  ;;  %v1059_v1 = vmul.f32 %v2857_v42, %v2979_v48  ;;  %v1355_v2 = vmul.f32 %v2863_v46, %v2979_v48 }
  0xee   : > { %v717_v20 = vmin.f32 %v685_v11, 6.0  ;;  %v1248_v24 = vsel %vm1246_vm2, %v1215_v56, %v1231_v40  ;;  %v1264_v60 = vsel %vm1246_vm2, %v1231_v40, %v1215_v56  ;;  %v1560_v27 = vsel %vm1542_vm4, %v1527_v13, %v1511_v39 }
  0xef   : > { %v1285_v5 = vsel %vm787_vm3, %v1264_v60, 0.0  ;;  %v1318_v25 = vadd.f32 %v1248_v24, %v1022_v15  ;;  %v958_v28 = vld [vmem:[#allocation2 + $0x40] sm:$0xff]  ;;  %v1544_v32 = vsel %vm1542_vm4, %v1511_v39, %v1527_v13  ;;  %v1582_v33 = vsel %vm790_vm5, %v1560_v27, 0.0 }
  0xf0   : > { %756 = vst.msk [vmem:[#allocation2 + $0x48] sm:$0xff] %vm742_vm1, %v717_v20  ;;  %v1317_v30 = vadd.f32 %v1285_v5, %v1021_v49  ;;  %v991_v36 = vmul.f32 %v2891_v3, %v958_v28  ;;  %v1154_v37 = vmul.f32 %v2872_v55, %v958_v28  ;;  %v1450_v38 = vmul.f32 %v2885_v62, %v958_v28 }
  0xf1   : > { %v618_v34 = vpop.f32.mrf.mxu0  ;;  %v1614_v35 = vadd.f32 %v1582_v33, %v1318_v25  ;;  %v895_v49 = vmul.f32 %v958_v28, %v2861_v45  ;;  %v728_v56 = vmin.f32 %v696_v47, 6.0  ;;  %v1091_v39 = vmul.f32 %v2865_v50, %v958_v28 }
  0xf2   : > { %v619_v31 = vadd.f32 %v2825_v16, %v618_v34  ;;  %v1613_v44 = vadd.f32 %v1544_v32, %v1317_v30  ;;  %v1186_v54 = vadd.f32 %v1154_v37, %v1121_v61  ;;  %v1482_v22 = vadd.f32 %v1450_v38, %v1417_v12 }
  0xf3   : > { %v1649_v53 = vadd.f32 %v2950_v4, %v1614_v35  ;;  %v1023_v63 = vadd.f32 %v991_v36, %v925_v52  ;;  %767 = vst.msk [vmem:[#allocation2 + $0xa0] sm:$0xff] %vm742_vm1, %v728_v56  ;;  %v3038_v61 = vadd.f32 %v895_v49, %v830_v8  ;;  %v1123_v15 = vadd.f32 %v1091_v39, %v1058_v9 }
  0xf4   : > { %v686_v23 = vmax.f32 %v619_v31, 0.0  ;;  %v1648_v58 = vadd.f32 %v2950_v4, %v1613_v44  ;;  %v1216_v21 = vrot.slane %v1186_v54, 7  ;;  %v1512_v12 = vrot.slane %v1482_v22, 1  ;;  %v648_v47 = vpop.f32.mrf.mxu3 }
  0xf5   : > { %v1681_v19 = vmax.f32 %v1649_v53, 0.0  ;;  %v1387_v52 = vmul.f32 %v2867_v51, %v958_v28  ;;  %v646_v24 = vadd.f32 %v2825_v16, %v645_v0  ;;  %v832_v5 = vmul.f32 %v958_v28, %v2855_v41 }
  0xf6   : > { %v718_v6 = vmin.f32 %v686_v23, 6.0  ;;  %v1680_v7 = vmax.f32 %v1648_v58, 0.0  ;;  %v1060_v35 = vmul.f32 %v2857_v42, %v958_v28  ;;  %v3064_v31 = vmul.f32 %v2863_v46, %v958_v28 }
  0xf7   : > { %v1713_v11 = vmin.f32 %v1681_v19, 6.0  ;;  %v3040_v40 = vld [vmem:[#allocation2 + $0x48] sm:$0xff]  ;;  %v697_v26 = vmax.f32 %v646_v24, 0.0  ;;  %v1419_v34 = vadd.f32 %v1387_v52, %v3001_v14  ;;  %v649_v19 = vadd.f32 %v2825_v16, %v648_v47 }
  0xf8   : > { %757 = vst.msk [vmem:[#allocation2 + $0x50] sm:$0xff] %vm742_vm1, %v718_v6  ;;  %v1712_v13 = vmin.f32 %v1680_v7, 6.0  ;;  %v992_v48 = vmul.f32 %v2891_v3, %v3040_v40  ;;  %v1155_v17 = vmul.f32 %v2872_v55, %v3040_v40  ;;  %v1451_v8 = vmul.f32 %v2885_v62, %v3040_v40 }
  0xf9   : > { %v620_v20 = vpop.f32.mrf.mxu0  ;;  %v896_v9 = vmul.f32 %v3040_v40, %v2861_v45  ;;  %v1092_v60 = vmul.f32 %v2865_v50, %v3040_v40  ;;  %v1388_v32 = vmul.f32 %v2867_v51, %v3040_v40  ;;  %v698_v52 = vmax.f32 %v649_v19, 0.0 }
  0xfa   : > { %v621_v25 = vadd.f32 %v2825_v16, %v620_v20  ;;  %v1743_v27 = vpack.c.bf16 %v1713_v11, %v1712_v13  ;;  %v1187_v30 = vadd.f32 %v1155_v17, %v1122_v29  ;;  %v1483_v33 = vadd.f32 %v1451_v8, %v1418_v59 }
  0xfb   : > { %v1024_v37 = vadd.f32 %v992_v48, %v3013_v10  ;;  %v729_v29 = vmin.f32 %v697_v26, 6.0  ;;  %v3067_v49 = vadd.f32 %v896_v9, %v3007_v18  ;;  %v1124_v53 = vadd.f32 %v1092_v60, %v1059_v1 }
  0xfc   : > { %v687_v36 = vmax.f32 %v621_v25, 0.0  ;;  %2402 = vmatmul.msk.bf16.gmra.mxu1 %vm742_vm1, %v1743_v27  ;;  %v1232_v38 = vrot.slane %v1187_v30, 7  ;;  %v1528_v44 = vrot.slane %v1483_v33, 1  ;;  %v1420_v22 = vadd.f32 %v1388_v32, %v1355_v2 }
  0xfd   : > { %768 = vst.msk [vmem:[#allocation2 + $0xa8] sm:$0xff] %vm742_vm1, %v729_v29  ;;  %v1061_v8 = vmul.f32 %v2857_v42, %v3040_v40  ;;  %v730_v9 = vmin.f32 %v698_v52, 6.0  ;;  %v1357_v32 = vmul.f32 %v2863_v46, %v3040_v40 }
  0xfe   : > { %v719_v54 = vmin.f32 %v687_v36, 6.0  ;;  %v1249_v14 = vsel %vm1246_vm2, %v1216_v21, %v1232_v38  ;;  %v1265_v59 = vsel %vm1246_vm2, %v1232_v38, %v1216_v21  ;;  %v1545_v23 = vsel %vm1542_vm4, %v1512_v12, %v1528_v44 }
  0xff   : > { %v1287_v10 = vsel %vm787_vm3, %v1265_v59, 0.0  ;;  %v1320_v28 = vadd.f32 %v1249_v14, %v1024_v37  ;;  %v1561_v18 = vsel %vm1542_vm4, %v1528_v44, %v1512_v12  ;;  %v960_v58 = vld [vmem:[#allocation2 + $0x50] sm:$0xff]  ;;  %769 = vst.msk [vmem:[#allocation2 + $0xb0] sm:$0xff] %vm742_vm1, %v730_v9  ;;  %v650_v44 = vpop.f32.mrf.mxu3 }
 0x100   : > { %758 = vst.msk [vmem:[#allocation2 + $0x58] sm:$0xff] %vm742_vm1, %v719_v54  ;;  %v1319_v56 = vadd.f32 %v1287_v10, %v1023_v63  ;;  %v1584_v39 = vsel %vm790_vm5, %v1561_v18, 0.0  ;;  %v993_v0 = vmul.f32 %v2891_v3, %v960_v58  ;;  %v1156_v6 = vmul.f32 %v2872_v55, %v960_v58 }
 0x101   : > { %v623_v1 = vpop.f32.mrf.mxu0  ;;  %v1616_v2 = vadd.f32 %v1584_v39, %v1320_v28  ;;  %v1452_v7 = vmul.f32 %v2885_v62, %v960_v58  ;;  %v897_v21 = vmul.f32 %v960_v58, %v2861_v45  ;;  %v833_v63 = vmul.f32 %v3040_v40, %v2855_v41 }
 0x102   : > { %v624_v11 = vadd.f32 %v2825_v16, %v623_v1  ;;  %v1615_v12 = vadd.f32 %v1545_v23, %v1319_v56  ;;  %v1188_v48 = vadd.f32 %v1156_v6, %v1123_v15  ;;  %v1093_v60 = vmul.f32 %v2865_v50, %v960_v58 }
 0x103   : > { %v1651_v13 = vadd.f32 %v2950_v4, %v1616_v2  ;;  %v1484_v17 = vadd.f32 %v1452_v7, %v1419_v34  ;;  %v1025_v27 = vadd.f32 %v993_v0, %v3038_v61  ;;  %v3097_v30 = vadd.f32 %v897_v21, %v832_v5 }
 0x104   : > { %v688_v20 = vmax.f32 %v624_v11, 0.0  ;;  %v1650_v24 = vadd.f32 %v2950_v4, %v1615_v12  ;;  %v1217_v26 = vrot.slane %v1188_v48, 7  ;;  %v1389_v34 = vmul.f32 %v2867_v51, %v960_v58 }
 0x105   : > { %v1683_v25 = vmax.f32 %v1651_v13, 0.0  ;;  %v1513_v38 = vrot.slane %v1484_v17, 1  ;;  %v1125_v29 = vadd.f32 %v1093_v60, %v1060_v35  ;;  %v3104_v47 = vmul.f32 %v960_v58, %v2855_v41 }
 0x106   : > { %v720_v33 = vmin.f32 %v688_v20, 6.0  ;;  %v1682_v15 = vmax.f32 %v1650_v24, 0.0  ;;  %v651_v59 = vadd.f32 %v2825_v16, %v650_v44  ;;  %v1421_v39 = vadd.f32 %v1389_v34, %v3064_v31 }
 0x107   : > { %v1715_v36 = vmin.f32 %v1683_v25, 6.0  ;;  %v961_v37 = vld [vmem:[#allocation2 + $0x58] sm:$0xff]  ;;  %v1062_v1 = vmul.f32 %v2857_v42, %v960_v58  ;;  %v1358_v2 = vmul.f32 %v2863_v46, %v960_v58  ;;  %v653_v20 = vpop.f32.mrf.mxu3 }
 0x108   : > { %759 = vst.msk [vmem:[#allocation2 + $0x60] sm:$0xff] %vm742_vm1, %v720_v33  ;;  %v1714_v61 = vmin.f32 %v1682_v15, 6.0  ;;  %v994_v40 = vmul.f32 %v2891_v3, %v961_v37  ;;  %v1157_v5 = vmul.f32 %v2872_v55, %v961_v37  ;;  %v1453_v54 = vmul.f32 %v2885_v62, %v961_v37 }
 0x109   : > { %v625_v14 = vpop.f32.mrf.mxu0  ;;  %v898_v10 = vmul.f32 %v961_v37, %v2861_v45  ;;  %v1094_v28 = vmul.f32 %v2865_v50, %v961_v37  ;;  %v1390_v35 = vmul.f32 %v2867_v51, %v961_v37  ;;  %v699_v0 = vmax.f32 %v651_v59, 0.0 }
 0x10a   : > { %v626_v23 = vadd.f32 %v2825_v16, %v625_v14  ;;  %v1744_v18 = vpack.c.bf16 %v1715_v36, %v1714_v61  ;;  %v1189_v56 = vadd.f32 %v1157_v5, %v1124_v53  ;;  %v1485_v19 = vadd.f32 %v1453_v54, %v1420_v22 }
 0x10b   : > { %v1026_v7 = vadd.f32 %v994_v40, %v3067_v49  ;;  %v3120_v11 = vadd.f32 %v898_v10, %v833_v63  ;;  %v731_v52 = vmin.f32 %v699_v0, 6.0  ;;  %v1126_v13 = vadd.f32 %v1094_v28, %v1061_v8 }
 0x10c   : > { %v689_v6 = vmax.f32 %v626_v23, 0.0  ;;  %2403 = vmatmul.msk.bf16.gmra.mxu1 %vm742_vm1, %v1744_v18  ;;  %v1233_v21 = vrot.slane %v1189_v56, 7  ;;  %v1529_v12 = vrot.slane %v1485_v19, 1  ;;  %v3122_v53 = vadd.f32 %v1390_v35, %v1357_v32 }
 0x10d   : > { %v3129_v48 = vmul.f32 %v961_v37, %v2855_v41  ;;  %770 = vst.msk [vmem:[#allocation2 + $0xb8] sm:$0xff] %vm742_vm1, %v731_v52  ;;  %v654_v25 = vadd.f32 %v2825_v16, %v653_v20  ;;  %v1359_v14 = vmul.f32 %v2863_v46, %v961_v37 }
 0x10e   : > { %v721_v31 = vmin.f32 %v689_v6, 6.0  ;;  %v1250_v22 = vsel %vm1246_vm2, %v1217_v26, %v1233_v21  ;;  %v1266_v58 = vsel %vm1246_vm2, %v1233_v21, %v1217_v26  ;;  %v1546_v17 = vsel %vm1542_vm4, %v1513_v38, %v1529_v12 }
 0x10f   : > { %v1289_v49 = vsel %vm787_vm3, %v1266_v58, 0.0  ;;  %v1322_v63 = vadd.f32 %v1250_v22, %v1026_v7  ;;  %v1562_v8 = vsel %vm1542_vm4, %v1529_v12, %v1513_v38  ;;  %v962_v24 = vld [vmem:[#allocation2 + $0x60] sm:$0xff]  ;;  %v700_v61 = vmax.f32 %v654_v25, 0.0  ;;  %v655_v58 = vpop.f32.mrf.mxu3 }
 0x110   : > { %760 = vst.msk [vmem:[#allocation2 + $0x68] sm:$0xff] %vm742_vm1, %v721_v31  ;;  %v1321_v9 = vadd.f32 %v1289_v49, %v1025_v27  ;;  %v1586_v60 = vsel %vm790_vm5, %v1562_v8, 0.0  ;;  %v995_v32 = vmul.f32 %v2891_v3, %v962_v24  ;;  %v1158_v26 = vmul.f32 %v2872_v55, %v962_v24 }
 0x111   : > { %v628_v33 = vpop.f32.mrf.mxu0  ;;  %v1618_v15 = vadd.f32 %v1586_v60, %v1322_v63  ;;  %v1454_v34 = vmul.f32 %v2885_v62, %v962_v24  ;;  %v899_v36 = vmul.f32 %v962_v24, %v2861_v45  ;;  %v1063_v27 = vmul.f32 %v2857_v42, %v961_v37 }
 0x112   : > { %v629_v38 = vadd.f32 %v2825_v16, %v628_v33  ;;  %v1617_v44 = vadd.f32 %v1546_v17, %v1321_v9  ;;  %v1190_v5 = vadd.f32 %v1158_v26, %v1125_v29  ;;  %v732_v28 = vmin.f32 %v700_v61, 6.0 }
 0x113   : > { %v1653_v40 = vadd.f32 %v2950_v4, %v1618_v15  ;;  %v1486_v54 = vadd.f32 %v1454_v34, %v1421_v39  ;;  %v1095_v35 = vmul.f32 %v2865_v50, %v962_v24  ;;  %v1027_v18 = vadd.f32 %v995_v32, %v3097_v30 }
 0x114   : > { %v690_v59 = vmax.f32 %v629_v38, 0.0  ;;  %v1652_v10 = vadd.f32 %v2950_v4, %v1617_v44  ;;  %v3154_v56 = vadd.f32 %v899_v36, %v3104_v47  ;;  %v1391_v19 = vmul.f32 %v2867_v51, %v962_v24  ;;  %771 = vst.msk [vmem:[#allocation2 + $0xc0] sm:$0xff] %vm742_vm1, %v732_v28 }
 0x115   : > { %v1685_v23 = vmax.f32 %v1653_v40, 0.0  ;;  %v1218_v29 = vrot.slane %v1190_v5, 7  ;;  %v1514_v37 = vrot.slane %v1486_v54, 1  ;;  %v1127_v21 = vadd.f32 %v1095_v35, %v1062_v1 }
 0x116   : > { %v722_v0 = vmin.f32 %v690_v59, 6.0  ;;  %v1684_v6 = vmax.f32 %v1652_v10, 0.0  ;;  %v1423_v12 = vadd.f32 %v1391_v19, %v1358_v2  ;;  %v836_v52 = vmul.f32 %v962_v24, %v2855_v41 }
 0x117   : > { %v1717_v39 = vmin.f32 %v1685_v23, 6.0  ;;  %v963_v7 = vld [vmem:[#allocation2 + $0x68] sm:$0xff]  ;;  %v656_v63 = vadd.f32 %v2825_v16, %v655_v58  ;;  %v1064_v60 = vmul.f32 %v2857_v42, %v962_v24  ;;  %v1360_v15 = vmul.f32 %v2863_v46, %v962_v24  ;;  %v658_v35 = vpop.f32.mrf.mxu3 }
 0x118   : > { %761 = vst.msk [vmem:[#allocation2 + $0x70] sm:$0xff] %vm742_vm1, %v722_v0  ;;  %v1716_v30 = vmin.f32 %v1684_v6, 6.0  ;;  %v996_v47 = vmul.f32 %v2891_v3, %v963_v7  ;;  %v1159_v31 = vmul.f32 %v2872_v55, %v963_v7  ;;  %v1455_v22 = vmul.f32 %v2885_v62, %v963_v7 }
 0x119   : > { %v630_v49 = vpop.f32.mrf.mxu0  ;;  %v900_v17 = vmul.f32 %v963_v7, %v2861_v45  ;;  %v1096_v1 = vmul.f32 %v2865_v50, %v963_v7  ;;  %v1392_v2 = vmul.f32 %v2867_v51, %v963_v7  ;;  %v701_v33 = vmax.f32 %v656_v63, 0.0 }
 0x11a   : > { %v631_v8 = vadd.f32 %v2825_v16, %v630_v49  ;;  %v1745_v20 = vpack.c.bf16 %v1717_v39, %v1716_v30  ;;  %v1191_v9 = vadd.f32 %v1159_v31, %v1126_v13  ;;  %v1028_v25 = vadd.f32 %v996_v47, %v3120_v11 }
 0x11b   : > { %v1487_v32 = vadd.f32 %v1455_v22, %v3122_v53  ;;  %v3174_v36 = vadd.f32 %v900_v17, %v3129_v48  ;;  %v3176_v38 = vadd.f32 %v1096_v1, %v1063_v27  ;;  %v733_v13 = vmin.f32 %v701_v33, 6.0 }
 0x11c   : > { %v691_v26 = vmax.f32 %v631_v8, 0.0  ;;  %2404 = vmatmul.msk.bf16.gmra.mxu1 %vm742_vm1, %v1745_v20  ;;  %v1234_v34 = vrot.slane %v1191_v9, 7  ;;  %v3178_v61 = vadd.f32 %v1392_v2, %v1359_v14  ;;  %v3181_v11 = vmul.f32 %v963_v7, %v2855_v41 }
 0x11d   : > { %v1530_v44 = vrot.slane %v1487_v32, 1  ;;  %v3188_v5 = vmul.f32 %v2857_v42, %v963_v7  ;;  %772 = vst.msk [vmem:[#allocation2 + $0xc8] sm:$0xff] %vm742_vm1, %v733_v13  ;;  %v1361_v31 = vmul.f32 %v2863_v46, %v963_v7 }
 0x11e   : > { %v723_v53 = vmin.f32 %v691_v26, 6.0  ;;  %v1251_v24 = vsel %vm1246_vm2, %v1218_v29, %v1234_v34  ;;  %v1267_v40 = vsel %vm1246_vm2, %v1234_v34, %v1218_v29  ;;  %v659_v29 = vadd.f32 %v2825_v16, %v658_v35 }
 0x11f   : > { %v1291_v48 = vsel %vm787_vm3, %v1267_v40, 0.0  ;;  %v1324_v27 = vadd.f32 %v1251_v24, %v1028_v25  ;;  %v1547_v54 = vsel %vm1542_vm4, %v1514_v37, %v1530_v44  ;;  %v1563_v14 = vsel %vm1542_vm4, %v1530_v44, %v1514_v37  ;;  %v964_v59 = vld [vmem:[#allocation2 + $0x70] sm:$0xff] }
 0x120   : > { %762 = vst.msk [vmem:[#allocation2 + $0x78] sm:$0xff] %vm742_vm1, %v723_v53  ;;  %v1323_v10 = vadd.f32 %v1291_v48, %v1027_v18  ;;  %v1588_v28 = vsel %vm790_vm5, %v1563_v14, 0.0  ;;  %v997_v23 = vmul.f32 %v2891_v3, %v964_v59  ;;  %v1160_v19 = vmul.f32 %v2872_v55, %v964_v59 }
 0x121   : > { %v633_v0 = vpop.f32.mrf.mxu0  ;;  %v1620_v6 = vadd.f32 %v1588_v28, %v1324_v27  ;;  %v1456_v37 = vmul.f32 %v2885_v62, %v964_v59  ;;  %v901_v39 = vmul.f32 %v964_v59, %v2861_v45  ;;  %v702_v58 = vmax.f32 %v659_v29, 0.0 }
 0x122   : > { %v634_v30 = vadd.f32 %v2825_v16, %v633_v0  ;;  %v1619_v47 = vadd.f32 %v1547_v54, %v1323_v10  ;;  %v1192_v18 = vadd.f32 %v1160_v19, %v1127_v21  ;;  %v1029_v49 = vadd.f32 %v997_v23, %v3154_v56 }
 0x123   : > { %v1655_v22 = vadd.f32 %v2950_v4, %v1620_v6  ;;  %v1488_v63 = vadd.f32 %v1456_v37, %v1423_v12  ;;  %v3210_v2 = vadd.f32 %v901_v39, %v836_v52  ;;  %v1097_v8 = vmul.f32 %v2865_v50, %v964_v59 }
 0x124   : > { %v692_v17 = vmax.f32 %v634_v30, 0.0  ;;  %v1654_v1 = vadd.f32 %v2950_v4, %v1619_v47  ;;  %v734_v9 = vmin.f32 %v702_v58, 6.0  ;;  %v1219_v25 = vrot.slane %v1192_v18, 7 }
 0x125   : > { %v1687_v20 = vmax.f32 %v1655_v22, 0.0  ;;  %v1393_v21 = vmul.f32 %v2867_v51, %v964_v59  ;;  %v1515_v33 = vrot.slane %v1488_v63, 1  ;;  %v1129_v26 = vadd.f32 %v1097_v8, %v1064_v60  ;;  %v660_v60 = vpop.f32.mrf.mxu3 }
 0x126   : > { %v724_v32 = vmin.f32 %v692_v17, 6.0  ;;  %v1686_v7 = vmax.f32 %v1654_v1, 0.0  ;;  %773 = vst.msk [vmem:[#allocation2 + $0xd0] sm:$0xff] %vm742_vm1, %v734_v9  ;;  %v838_v44 = vmul.f32 %v964_v59, %v2855_v41  ;;  %v3217_v52 = vmul.f32 %v2857_v42, %v964_v59 }
 0x127   : > { %v1719_v34 = vmin.f32 %v1687_v20, 6.0  ;;  %v965_v56 = vld [vmem:[#allocation2 + $0x78] sm:$0xff]  ;;  %v1425_v12 = vadd.f32 %v1393_v21, %v1360_v15  ;;  %v661_v27 = vadd.f32 %v2825_v16, %v660_v60  ;;  %v1362_v23 = vmul.f32 %v2863_v46, %v964_v59 }
 0x128   : > { %763 = vst.msk [vmem:[#allocation2 + $0x80] sm:$0xff] %vm742_vm1, %v724_v32  ;;  %v1718_v13 = vmin.f32 %v1686_v7, 6.0  ;;  %v998_v53 = vmul.f32 %v2891_v3, %v965_v56  ;;  %v1161_v24 = vmul.f32 %v2872_v55, %v965_v56  ;;  %v1457_v40 = vmul.f32 %v2885_v62, %v965_v56 }
 0x129   : > { %v635_v48 = vpop.f32.mrf.mxu0  ;;  %v902_v15 = vmul.f32 %v965_v56, %v2861_v45  ;;  %v1098_v54 = vmul.f32 %v2865_v50, %v965_v56  ;;  %v1394_v14 = vmul.f32 %v2867_v51, %v965_v56  ;;  %v703_v6 = vmax.f32 %v661_v27, 0.0 }
 0x12a   : > { %v636_v10 = vadd.f32 %v2825_v16, %v635_v48  ;;  %v1746_v28 = vpack.c.bf16 %v1719_v34, %v1718_v13  ;;  %v1193_v35 = vadd.f32 %v1161_v24, %v3176_v38  ;;  %v1030_v19 = vadd.f32 %v998_v53, %v3174_v36 }
 0x12b   : > { %v1489_v0 = vadd.f32 %v1457_v40, %v3178_v61  ;;  %v3233_v29 = vadd.f32 %v902_v15, %v3181_v11  ;;  %v3237_v30 = vadd.f32 %v1098_v54, %v3188_v5  ;;  %v3239_v47 = vadd.f32 %v1394_v14, %v1361_v31 }
 0x12c   : > { %v693_v37 = vmax.f32 %v636_v10, 0.0  ;;  %2405 = vmatmul.msk.bf16.gmra.mxu1 %vm742_vm1, %v1746_v28  ;;  %v1235_v39 = vrot.slane %v1193_v35, 7  ;;  %v735_v18 = vmin.f32 %v703_v6, 6.0  ;;  %v3242_v59 = vmul.f32 %v965_v56, %v2855_v41 }
 0x12d   : > { %v1531_v38 = vrot.slane %v1489_v0, 1  ;;  %v3245_v36 = vmul.f32 %v2857_v42, %v965_v56  ;;  %v3252_v5 = vmul.f32 %v2863_v46, %v965_v56  ;;  %v663_v9 = vpop.f32.mrf.mxu3  ;;  %v3275_v56 = vld [vmem:[#allocation2 + $0xa0] sm:$0xff] }
 0x12e   : > { %v725_v61 = vmin.f32 %v693_v37, 6.0  ;;  %v1252_v11 = vsel %vm1246_vm2, %v1219_v25, %v1235_v39  ;;  %v1268_v22 = vsel %vm1246_vm2, %v1235_v39, %v1219_v25  ;;  %774 = vst.msk [vmem:[#allocation2 + $0xd8] sm:$0xff] %vm742_vm1, %v735_v18  ;;  %v3280_v40 = vmul.f32 %v2891_v3, %v3275_v56 }
 0x12f   : > { %v1293_v31 = vsel %vm787_vm3, %v1268_v22, 0.0  ;;  %v1326_v58 = vadd.f32 %v1252_v11, %v1030_v19  ;;  %v1548_v63 = vsel %vm1542_vm4, %v1515_v33, %v1531_v38  ;;  %v1564_v17 = vsel %vm1542_vm4, %v1531_v38, %v1515_v33  ;;  %v3261_v1 = vld [vmem:[#allocation2 + $0x80] sm:$0xff] }
 0x130   : > { %764 = vst.msk [vmem:[#allocation2 + $0x88] sm:$0xff] %vm742_vm1, %v725_v61  ;;  %v1325_v8 = vadd.f32 %v1293_v31, %v1029_v49  ;;  %v1590_v20 = vsel %vm790_vm5, %v1564_v17, 0.0  ;;  %v999_v25 = vmul.f32 %v2891_v3, %v3261_v1  ;;  %v1162_v21 = vmul.f32 %v2872_v55, %v3261_v1 }
 0x131   : > { %v638_v32 = vpop.f32.mrf.mxu0  ;;  %v1622_v7 = vadd.f32 %v1590_v20, %v1326_v58  ;;  %v664_v33 = vadd.f32 %v2825_v16, %v663_v9  ;;  %v1458_v34 = vmul.f32 %v2885_v62, %v3261_v1  ;;  %v903_v49 = vmul.f32 %v3261_v1, %v2861_v45 }
 0x132   : > { %v639_v13 = vadd.f32 %v2825_v16, %v638_v32  ;;  %v1621_v53 = vadd.f32 %v1548_v63, %v1325_v8  ;;  %v1194_v24 = vadd.f32 %v1162_v21, %v1129_v26  ;;  %v1031_v27 = vadd.f32 %v999_v25, %v3210_v2  ;;  %v3313_v63 = vld [vmem:[%s4226_s2] ss:$0 sm:$0xff] }
 0x133   : > { %v1657_v60 = vadd.f32 %v2950_v4, %v1622_v7  ;;  %v704_v48 = vmax.f32 %v664_v33, 0.0  ;;  %v1490_v15 = vadd.f32 %v1458_v34, %v1425_v12  ;;  %v3285_v10 = vadd.f32 %v903_v49, %v838_v44  ;;  %v3292_v12 = vld [vmem:[#allocation2 + $0xa8] sm:$0xff] }
 0x134   : > { %v694_v54 = vmax.f32 %v639_v13, 0.0  ;;  %v1656_v14 = vadd.f32 %v2950_v4, %v1621_v53  ;;  %v1099_v16 = vmul.f32 %v2865_v50, %v3261_v1  ;;  %v1220_v35 = vrot.slane %v1194_v24, 7 }
 0x135   : > { %v1689_v28 = vmax.f32 %v1657_v60, 0.0  ;;  %v736_v26 = vmin.f32 %v704_v48, 6.0  ;;  %v1395_v19 = vmul.f32 %v2867_v51, %v3261_v1  ;;  %v1516_v37 = vrot.slane %v1490_v15, 1 }
 0x136   : > { %v726_v0 = vmin.f32 %v694_v54, 6.0  ;;  %v1688_v6 = vmax.f32 %v1656_v14, 0.0  ;;  %v1131_v2 = vadd.f32 %v1099_v16, %v3217_v52  ;;  %v840_v18 = vmul.f32 %v3261_v1, %v2855_v41 }
 0x137   : > { %v1721_v39 = vmin.f32 %v1689_v28, 6.0  ;;  %775 = vst.msk [vmem:[#allocation2 + $0xe0] sm:$0xff] %vm742_vm1, %v736_v26  ;;  %v3295_v44 = vld [vmem:[#allocation2 + $0x88] sm:$0xff]  ;;  %v1427_v38 = vadd.f32 %v1395_v19, %v1362_v23  ;;  %v3301_v61 = vmul.f32 %v2891_v3, %v3292_v12  ;;  %v665_v23 = vpop.f32.mrf.mxu3  ;;  %v1068_v32 = vmul.f32 %v2857_v42, %v3261_v1 }
 0x138   : > { %765 = vst.msk [vmem:[#allocation2 + $0x90] sm:$0xff] %vm742_vm1, %v726_v0  ;;  %v1720_v11 = vmin.f32 %v1688_v6, 6.0  ;;  %v1000_v52 = vmul.f32 %v2891_v3, %v3295_v44  ;;  %v1163_v22 = vmul.f32 %v2872_v55, %v3295_v44  ;;  %v1459_v31 = vmul.f32 %v2885_v62, %v3295_v44 }
 0x139   : > { %v640_v58 = vpop.f32.mrf.mxu0  ;;  %v666_v17 = vadd.f32 %v3313_v63, %v665_v23  ;;  %v904_v8 = vmul.f32 %v3295_v44, %v2861_v45  ;;  %v1100_v20 = vmul.f32 %v2865_v50, %v3295_v44  ;;  %v1396_v9 = vmul.f32 %v2867_v51, %v3295_v44 }
 0x13a   : > { %v641_v62 = vadd.f32 %v3313_v63, %v640_v58  ;;  %v1747_v25 = vpack.c.bf16 %v1721_v39, %v1720_v11  ;;  %v1195_v21 = vadd.f32 %v1163_v22, %v3237_v30  ;;  %v1032_v7 = vadd.f32 %v1000_v52, %v3233_v29  ;;  %v3368_v52 = vld [vmem:[%s4227_s3 + $0x8] ss:$0 sm:$0xff] }
 0x13b   : > { %v1491_v33 = vadd.f32 %v1459_v31, %v3239_v47  ;;  %v705_v34 = vmax.f32 %v666_v17, 0.0  ;;  %v3329_v49 = vadd.f32 %v904_v8, %v3242_v59  ;;  %v3333_v24 = vadd.f32 %v1100_v20, %v3245_v36 }
 0x13c   : > { %v695_v13 = vmax.f32 %v641_v62, 0.0  ;;  %2406 = vmatmul.msk.bf16.gmra.mxu1 %vm742_vm1, %v1747_v25  ;;  %v1236_v53 = vrot.slane %v1195_v21, 7  ;;  %v3336_v30 = vadd.f32 %v1396_v9, %v3252_v5  ;;  %v841_v29 = vmul.f32 %v3295_v44, %v2855_v41 }
 0x13d   : > { %v1532_v60 = vrot.slane %v1491_v33, 1  ;;  %v737_v48 = vmin.f32 %v705_v34, 6.0  ;;  %v1069_v47 = vmul.f32 %v2857_v42, %v3295_v44  ;;  %v1166_v36 = vmul.f32 %v2872_v55, %v3275_v56 }
 0x13e   : > { %v727_v59 = vmin.f32 %v695_v13, 6.0  ;;  %v1253_v15 = vsel %vm1246_vm2, %v1220_v35, %v1236_v53  ;;  %v1269_v54 = vsel %vm1246_vm2, %v1236_v53, %v1220_v35  ;;  %v1167_v17 = vmul.f32 %v2872_v55, %v3292_v12 }
 0x13f   : > { %v1295_v5 = vsel %vm787_vm3, %v1269_v54, 0.0  ;;  %v1328_v14 = vadd.f32 %v1253_v15, %v1032_v7  ;;  %v1549_v16 = vsel %vm1542_vm4, %v1516_v37, %v1532_v60  ;;  %v1565_v28 = vsel %vm1542_vm4, %v1532_v60, %v1516_v37  ;;  %776 = vst.msk [vmem:[#allocation2 + $0xe8] sm:$0xff] %vm742_vm1, %v737_v48  ;;  %v3355_v26 = vld [vmem:[#allocation2 + $0x90] sm:$0xff]  ;;  %v668_v0 = vpop.f32.mrf.mxu3 }
 0x140   : > { %766 = vst.msk [vmem:[#allocation2 + $0x98] sm:$0xff] %vm742_vm1, %v727_v59  ;;  %v1327_v35 = vadd.f32 %v1295_v5, %v1031_v27  ;;  %v1592_v19 = vsel %vm790_vm5, %v1565_v28, 0.0  ;;  %v1001_v6 = vmul.f32 %v2891_v3, %v3355_v26  ;;  %v1164_v39 = vmul.f32 %v2872_v55, %v3355_v26 }
 0x141   : > { %v1624_v11 = vadd.f32 %v1592_v19, %v1328_v14  ;;  %v669_v37 = vadd.f32 %v3313_v63, %v668_v0  ;;  %v1460_v27 = vmul.f32 %v3368_v52, %v3355_v26  ;;  %v905_v22 = vmul.f32 %v3355_v26, %v2861_v45 }
 0x142   : > { %v1623_v31 = vadd.f32 %v1549_v16, %v1327_v35  ;;  %v1196_v23 = vadd.f32 %v1164_v39, %v1131_v2  ;;  %v1101_v58 = vmul.f32 %v2865_v50, %v3355_v26  ;;  %v1033_v21 = vadd.f32 %v1001_v6, %v3285_v10 }
 0x143   : > { %v1659_v8 = vadd.f32 %v2950_v4, %v1624_v11  ;;  %v706_v20 = vmax.f32 %v669_v37, 0.0  ;;  %v1492_v9 = vadd.f32 %v1460_v27, %v1427_v38  ;;  %v937_v62 = vadd.f32 %v905_v22, %v840_v18 }
 0x144   : > { %v1658_v25 = vadd.f32 %v2950_v4, %v1623_v31  ;;  %v1221_v7 = vrot.slane %v1196_v23, 7  ;;  %v1133_v33 = vadd.f32 %v1101_v58, %v1068_v32  ;;  %v1364_v53 = vmul.f32 %v2863_v46, %v3261_v1 }
 0x145   : > { %v1691_v34 = vmax.f32 %v1659_v8, 0.0  ;;  %v738_v13 = vmin.f32 %v706_v20, 6.0  ;;  %v1517_v2 = vrot.slane %v1492_v9, 1  ;;  %v1035_v48 = vadd.f32 %v3280_v40, %v937_v62 }
 0x146   : > { %v1690_v60 = vmax.f32 %v1658_v25, 0.0  ;;  %v1198_v59 = vadd.f32 %v1166_v36, %v1133_v33  ;;  %v1365_v38 = vmul.f32 %v2863_v46, %v3295_v44  ;;  %v1397_v10 = vmul.f32 %v2867_v51, %v3355_v26 }
 0x147   : > { %v1723_v18 = vmin.f32 %v1691_v34, 6.0  ;;  %777 = vst.msk [vmem:[#allocation2 + $0xf0] sm:$0xff] %vm742_vm1, %v738_v13  ;;  %v3387_v4 = vld [vmem:[#allocation2 + $0x98] sm:$0xff]  ;;  %v1462_v32 = vmul.f32 %v3368_v52, %v3275_v56  ;;  %v1463_v1 = vmul.f32 %v3368_v52, %v3292_v12  ;;  %v670_v36 = vpop.f32.mrf.mxu3  ;;  %v842_v28 = vmul.f32 %v3355_v26, %v2855_v41 }
 0x148   : > { %v1722_v15 = vmin.f32 %v1690_v60, 6.0  ;;  %v1002_v40 = vmul.f32 %v2891_v3, %v3387_v4  ;;  %v1165_v44 = vmul.f32 %v2872_v55, %v3387_v4  ;;  %v1461_v54 = vmul.f32 %v3368_v52, %v3387_v4 }
 0x149   : > { %v906_v5 = vmul.f32 %v3387_v4, %v2861_v45  ;;  %v1102_v14 = vmul.f32 %v2865_v50, %v3387_v4  ;;  %v1398_v16 = vmul.f32 %v2867_v51, %v3387_v4  ;;  %v1222_v6 = vrot.slane %v1198_v59, 7 }
 0x14a   : > { %v1748_v35 = vpack.c.bf16 %v1723_v18, %v1722_v15  ;;  %v1197_v19 = vadd.f32 %v1165_v44, %v3333_v24  ;;  %v1493_v0 = vadd.f32 %v1461_v54, %v3336_v30  ;;  %v1429_v37 = vadd.f32 %v1397_v10, %v1364_v53 }
 0x14b   : > { %v938_v39 = vadd.f32 %v906_v5, %v841_v29  ;;  %v1134_v11 = vadd.f32 %v1102_v14, %v1069_v47  ;;  %v1430_v27 = vadd.f32 %v1398_v16, %v1365_v38  ;;  %v1034_v22 = vadd.f32 %v1002_v40, %v3329_v49 }
 0x14c   : > { %2407 = vmatmul.msk.bf16.gmra.mxu1 %vm742_vm1, %v1748_v35  ;;  %v1237_v31 = vrot.slane %v1197_v19, 7  ;;  %v1533_v23 = vrot.slane %v1493_v0, 1  ;;  %v671_v58 = vadd.f32 %v3313_v63, %v670_v36  ;;  %v1494_v9 = vadd.f32 %v1462_v32, %v1429_v37 }
 0x14d   : > { %v1036_v8 = vadd.f32 %v3301_v61, %v938_v39  ;;  %v1199_v20 = vadd.f32 %v1167_v17, %v1134_v11  ;;  %v1495_v24 = vadd.f32 %v1463_v1, %v1430_v27  ;;  %v3439_v1 = vld [vmem:[%s4228_s4] ss:$0 sm:$0xff]  ;;  %v843_v16 = vmul.f32 %v3387_v4, %v2855_v41 }
 0x14e   : > { %v1254_v30 = vsel %vm1246_vm2, %v1221_v7, %v1237_v31  ;;  %v1270_v29 = vsel %vm1246_vm2, %v1237_v31, %v1221_v7  ;;  %v1550_v47 = vsel %vm1542_vm4, %v1517_v2, %v1533_v23  ;;  %v1566_v49 = vsel %vm1542_vm4, %v1533_v23, %v1517_v2  ;;  %v3456_v31 = vld [vmem:[#allocation2 + $0xb0] sm:$0xff] }
 0x14f   : > { %v1297_v62 = vsel %vm787_vm3, %v1270_v29, 0.0  ;;  %v1330_v25 = vadd.f32 %v1254_v30, %v1034_v22  ;;  %v1594_v61 = vsel %vm790_vm5, %v1566_v49, 0.0  ;;  %v1238_v17 = vrot.slane %v1199_v20, 7  ;;  %v673_v60 = vpop.f32.mrf.mxu3  ;;  %v3463_v29 = vld [vmem:[#allocation2 + $0xb8] sm:$0xff] }
 0x150   : > { %v1329_v33 = vadd.f32 %v1297_v62, %v1033_v21  ;;  %v1518_v34 = vrot.slane %v1494_v9, 1  ;;  %v1534_v13 = vrot.slane %v1495_v24, 1  ;;  %v707_v53 = vmax.f32 %v671_v58, 0.0 }
 0x151   : > { %v1626_v7 = vadd.f32 %v1594_v61, %v1330_v25  ;;  %v1255_v59 = vsel %vm1246_vm2, %v1222_v6, %v1238_v17  ;;  %v1271_v2 = vsel %vm1246_vm2, %v1238_v17, %v1222_v6  ;;  %v674_v38 = vadd.f32 %v3313_v63, %v673_v60 }
 0x152   : > { %v1625_v18 = vadd.f32 %v1550_v47, %v1329_v33  ;;  %v1299_v10 = vsel %vm787_vm3, %v1271_v2, 0.0  ;;  %v1332_v32 = vadd.f32 %v1255_v59, %v1036_v8  ;;  %v1551_v21 = vsel %vm1542_vm4, %v1518_v34, %v1534_v13 }
 0x153   : > { %v1661_v15 = vadd.f32 %v3439_v1, %v1626_v7  ;;  %v1331_v40 = vadd.f32 %v1299_v10, %v1035_v48  ;;  %v1567_v44 = vsel %vm1542_vm4, %v1534_v13, %v1518_v34  ;;  %v739_v54 = vmin.f32 %v707_v53, 6.0 }
 0x154   : > { %v1660_v36 = vadd.f32 %v3439_v1, %v1625_v18  ;;  %v1596_v5 = vsel %vm790_vm5, %v1567_v44, 0.0  ;;  %v708_v14 = vmax.f32 %v674_v38, 0.0  ;;  %v907_v48 = vmul.f32 %v3275_v56, %v2861_v45 }
 0x155   : > { %v1693_v35 = vmax.f32 %v1661_v15, 0.0  ;;  %v1627_v19 = vadd.f32 %v1551_v21, %v1331_v40  ;;  %v1628_v0 = vadd.f32 %v1596_v5, %v1332_v32  ;;  %778 = vst.msk [vmem:[#allocation2 + $0xf8] sm:$0xff] %vm742_vm1, %v739_v54  ;;  %v908_v22 = vmul.f32 %v3292_v12, %v2861_v45 }
 0x156   : > { %v1692_v6 = vmax.f32 %v1660_v36, 0.0  ;;  %v740_v39 = vmin.f32 %v708_v14, 6.0  ;;  %v939_v58 = vadd.f32 %v907_v48, %v842_v28  ;;  %v1005_v8 = vmul.f32 %v2891_v3, %v3456_v31 }
 0x157   : > { %v1725_v11 = vmin.f32 %v1693_v35, 6.0  ;;  %v1662_v37 = vadd.f32 %v3439_v1, %v1627_v19  ;;  %v1663_v27 = vadd.f32 %v3439_v1, %v1628_v0  ;;  %v1070_v20 = vmul.f32 %v2857_v42, %v3355_v26  ;;  %v675_v13 = vpop.f32.mrf.mxu3 }
 0x158   : > { %v1724_v23 = vmin.f32 %v1692_v6, 6.0  ;;  %779 = vst.msk [vmem:[#allocation2 + $0x100] sm:$0xff] %vm742_vm1, %v740_v39  ;;  %v940_v30 = vadd.f32 %v908_v22, %v843_v16  ;;  %v1071_v47 = vmul.f32 %v2857_v42, %v3387_v4  ;;  %v1006_v62 = vmul.f32 %v2891_v3, %v3463_v29 }
 0x159   : > { %v1694_v9 = vmax.f32 %v1662_v37, 0.0  ;;  %v1695_v24 = vmax.f32 %v1663_v27, 0.0  ;;  %v1103_v28 = vmul.f32 %v2865_v50, %v3275_v56  ;;  %v1104_v25 = vmul.f32 %v2865_v50, %v3292_v12 }
 0x15a   : > { %v1749_v49 = vpack.c.bf16 %v1725_v11, %v1724_v23  ;;  %v1168_v33 = vmul.f32 %v2872_v55, %v3456_v31  ;;  %v1169_v34 = vmul.f32 %v2872_v55, %v3463_v29  ;;  %v1366_v7 = vmul.f32 %v2863_v46, %v3355_v26 }
 0x15b   : > { %v1726_v61 = vmin.f32 %v1694_v9, 6.0  ;;  %v1727_v17 = vmin.f32 %v1695_v24, 6.0  ;;  %v1135_v53 = vadd.f32 %v1103_v28, %v1070_v20  ;;  %v1136_v60 = vadd.f32 %v1104_v25, %v1071_v47  ;;  %v3513_v47 = vld [vmem:[#allocation2 + $0xc8] sm:$0xff] }
 0x15c   : > { %2408 = vmatmul.msk.bf16.gmra.mxu1 %vm742_vm1, %v1749_v49  ;;  %v1367_v59 = vmul.f32 %v2863_v46, %v3387_v4  ;;  %v1399_v38 = vmul.f32 %v2867_v51, %v3275_v56  ;;  %v1400_v18 = vmul.f32 %v2867_v51, %v3292_v12  ;;  %v1464_v10 = vmul.f32 %v3368_v52, %v3456_v31 }
 0x15d   : > { %v1750_v2 = vpack.c.bf16 %v1727_v17, %v1726_v61  ;;  %v1200_v32 = vadd.f32 %v1168_v33, %v1135_v53  ;;  %v1201_v21 = vadd.f32 %v1169_v34, %v1136_v60  ;;  %v1465_v15 = vmul.f32 %v3368_v52, %v3463_v29 }
 0x15e   : > { %v676_v26 = vadd.f32 %v3313_v63, %v675_v13  ;;  %v1037_v4 = vadd.f32 %v1005_v8, %v939_v58  ;;  %v1038_v40 = vadd.f32 %v1006_v62, %v940_v30  ;;  %v1431_v44 = vadd.f32 %v1399_v38, %v1366_v7  ;;  %v3511_v30 = vld [vmem:[#allocation2 + $0xc0] sm:$0xff] }
 0x15f   : > { %2409 = vmatmul.msk.bf16.vlgmr.msra.gmra.mxu2 %vm742_vm1, %v1750_v2  ;;  %v1432_v54 = vadd.f32 %v1400_v18, %v1367_v59  ;;  %v1223_v36 = vrot.slane %v1200_v32, 7  ;;  %v1239_v5 = vrot.slane %v1201_v21, 7  ;;  %v844_v16 = vmul.f32 %v3275_v56, %v2855_v41 }
 0x160   : > { %v709_v14 = vmax.f32 %v676_v26, 0.0  ;;  %v1496_v35 = vadd.f32 %v1464_v10, %v1431_v44  ;;  %v845_v0 = vmul.f32 %v3292_v12, %v2855_v41  ;;  %v909_v63 = vmul.f32 %v3456_v31, %v2861_v45 }
 0x161   : > { %v1497_v19 = vadd.f32 %v1465_v15, %v1432_v54  ;;  %v1256_v48 = vsel %vm1246_vm2, %v1223_v36, %v1239_v5  ;;  %v1272_v6 = vsel %vm1246_vm2, %v1239_v5, %v1223_v36  ;;  %v910_v11 = vmul.f32 %v3463_v29, %v2861_v45 }
 0x162   : > { %v741_v39 = vmin.f32 %v709_v14, 6.0  ;;  %v1301_v37 = vsel %vm787_vm3, %v1272_v6, 0.0  ;;  %v1334_v27 = vadd.f32 %v1256_v48, %v1038_v40  ;;  %v1519_v22 = vrot.slane %v1496_v35, 1 }
 0x163   : > { %v1535_v23 = vrot.slane %v1497_v19, 1  ;;  %v1333_v58 = vadd.f32 %v1301_v37, %v1037_v4  ;;  %v941_v8 = vadd.f32 %v909_v63, %v844_v16  ;;  %v942_v24 = vadd.f32 %v910_v11, %v845_v0 }
 0x164   : > { %780 = vst.msk [vmem:[#allocation2 + $0x108] sm:$0xff] %vm742_vm1, %v741_v39  ;;  %v1072_v49 = vmul.f32 %v2857_v42, %v3275_v56  ;;  %v1007_v25 = vmul.f32 %v2891_v3, %v3511_v30  ;;  %v1073_v61 = vmul.f32 %v2857_v42, %v3292_v12  ;;  %v1008_v33 = vmul.f32 %v2891_v3, %v3513_v47 }
 0x165   : > { %v1552_v20 = vsel %vm1542_vm4, %v1519_v22, %v1535_v23  ;;  %v1568_v9 = vsel %vm1542_vm4, %v1535_v23, %v1519_v22  ;;  %v1105_v34 = vmul.f32 %v2865_v50, %v3456_v31  ;;  %v1106_v13 = vmul.f32 %v2865_v50, %v3463_v29 }
 0x166   : > { %v1598_v62 = vsel %vm790_vm5, %v1568_v9, 0.0  ;;  %v1629_v28 = vadd.f32 %v1552_v20, %v1333_v58  ;;  %v1170_v60 = vmul.f32 %v2872_v55, %v3511_v30  ;;  %v1171_v7 = vmul.f32 %v2872_v55, %v3513_v47 }
 0x167   : > { %v1630_v17 = vadd.f32 %v1598_v62, %v1334_v27  ;;  %v1368_v59 = vmul.f32 %v2863_v46, %v3275_v56  ;;  %v1137_v38 = vadd.f32 %v1105_v34, %v1072_v49  ;;  %v1138_v18 = vadd.f32 %v1106_v13, %v1073_v61 }
 0x168   : > { %v1664_v53 = vadd.f32 %v3439_v1, %v1629_v28  ;;  %v1369_v10 = vmul.f32 %v2863_v46, %v3292_v12  ;;  %v1039_v21 = vadd.f32 %v1007_v25, %v941_v8  ;;  %v1401_v15 = vmul.f32 %v2867_v51, %v3456_v31 }
 0x169   : > { %v1665_v2 = vadd.f32 %v3439_v1, %v1630_v17  ;;  %v1402_v26 = vmul.f32 %v2867_v51, %v3463_v29  ;;  %v1202_v40 = vadd.f32 %v1170_v60, %v1137_v38  ;;  %v1203_v44 = vadd.f32 %v1171_v7, %v1138_v18  ;;  %v3572_v17 = vld [vmem:[#allocation2 + $0xd8] sm:$0xff] }
 0x16a   : > { %v1696_v32 = vmax.f32 %v1664_v53, 0.0  ;;  %v1466_v56 = vmul.f32 %v3368_v52, %v3511_v30  ;;  %v1040_v36 = vadd.f32 %v1008_v33, %v942_v24  ;;  %v1433_v5 = vadd.f32 %v1401_v15, %v1368_v59  ;;  %v3562_v24 = vld [vmem:[#allocation2 + $0xd0] sm:$0xff] }
 0x16b   : > { %v1697_v4 = vmax.f32 %v1665_v2, 0.0  ;;  %v1434_v14 = vadd.f32 %v1402_v26, %v1369_v10  ;;  %v1224_v12 = vrot.slane %v1202_v40, 7  ;;  %v1240_v35 = vrot.slane %v1203_v44, 7 }
 0x16c   : > { %v1728_v54 = vmin.f32 %v1696_v32, 6.0  ;;  %v1467_v19 = vmul.f32 %v3368_v52, %v3513_v47  ;;  %v1498_v0 = vadd.f32 %v1466_v56, %v1433_v5  ;;  %v846_v63 = vmul.f32 %v3456_v31, %v2855_v41 }
 0x16d   : > { %v1729_v16 = vmin.f32 %v1697_v4, 6.0  ;;  %v1257_v6 = vsel %vm1246_vm2, %v1224_v12, %v1240_v35  ;;  %v1273_v39 = vsel %vm1246_vm2, %v1240_v35, %v1224_v12  ;;  %v847_v23 = vmul.f32 %v3463_v29, %v2855_v41 }
 0x16e   : > { %v1499_v11 = vadd.f32 %v1467_v19, %v1434_v14  ;;  %v1303_v37 = vsel %vm787_vm3, %v1273_v39, 0.0  ;;  %v1336_v27 = vadd.f32 %v1257_v6, %v1040_v36  ;;  %v1520_v22 = vrot.slane %v1498_v0, 1 }
 0x16f   : > { %v1751_v48 = vpack.c.bf16 %v1729_v16, %v1728_v54  ;;  %v1335_v58 = vadd.f32 %v1303_v37, %v1039_v21  ;;  %v911_v20 = vmul.f32 %v3511_v30, %v2861_v45  ;;  %v912_v9 = vmul.f32 %v3513_v47, %v2861_v45 }
 0x170   : > { %v1536_v8 = vrot.slane %v1499_v11, 1  ;;  %v1009_v28 = vmul.f32 %v2891_v3, %v3562_v24  ;;  %v1074_v33 = vmul.f32 %v2857_v42, %v3456_v31  ;;  %v1075_v34 = vmul.f32 %v2857_v42, %v3463_v29 }
 0x171   : > { %2410 = vmatmul.msk.bf16.gmra.mxu2 %vm742_vm1, %v1751_v48  ;;  %v943_v53 = vadd.f32 %v911_v20, %v846_v63  ;;  %v944_v60 = vadd.f32 %v912_v9, %v847_v23  ;;  %v1010_v7 = vmul.f32 %v2891_v3, %v3572_v17  ;;  %v1107_v2 = vmul.f32 %v2865_v50, %v3511_v30 }
 0x172   : > { %v1553_v49 = vsel %vm1542_vm4, %v1520_v22, %v1536_v8  ;;  %v1569_v62 = vsel %vm1542_vm4, %v1536_v8, %v1520_v22  ;;  %v1108_v38 = vmul.f32 %v2865_v50, %v3513_v47  ;;  %v1172_v18 = vmul.f32 %v2872_v55, %v3562_v24 }
 0x173   : > { %v1600_v25 = vsel %vm790_vm5, %v1569_v62, 0.0  ;;  %v1631_v61 = vadd.f32 %v1553_v49, %v1335_v58  ;;  %v1173_v32 = vmul.f32 %v2872_v55, %v3572_v17  ;;  %v1370_v21 = vmul.f32 %v2863_v46, %v3456_v31 }
 0x174   : > { %v1632_v13 = vadd.f32 %v1600_v25, %v1336_v27  ;;  %v1371_v15 = vmul.f32 %v2863_v46, %v3463_v29  ;;  %v1139_v4 = vadd.f32 %v1107_v2, %v1074_v33  ;;  %v1140_v40 = vadd.f32 %v1108_v38, %v1075_v34 }
 0x175   : > { %v1666_v59 = vadd.f32 %v3439_v1, %v1631_v61  ;;  %v1403_v44 = vmul.f32 %v2867_v51, %v3511_v30  ;;  %v1404_v54 = vmul.f32 %v2867_v51, %v3513_v47  ;;  %v1468_v36 = vmul.f32 %v3368_v52, %v3562_v24 }
 0x176   : > { %v1667_v10 = vadd.f32 %v3439_v1, %v1632_v13  ;;  %v1469_v5 = vmul.f32 %v3368_v52, %v3572_v17  ;;  %v1204_v14 = vadd.f32 %v1172_v18, %v1139_v4  ;;  %v1205_v16 = vadd.f32 %v1173_v32, %v1140_v40 }
 0x177   : > { %v1698_v26 = vmax.f32 %v1666_v59, 0.0  ;;  %v1042_v12 = vadd.f32 %v1010_v7, %v944_v60  ;;  %v1435_v35 = vadd.f32 %v1403_v44, %v1370_v21  ;;  %v1436_v19 = vadd.f32 %v1404_v54, %v1371_v15  ;;  %v3625_v60 = vld [vmem:[#allocation2 + $0xe0] sm:$0xff]  ;;  %v3627_v7 = vld [vmem:[#allocation2 + $0xe8] sm:$0xff] }
 0x178   : > { %v1699_v56 = vmax.f32 %v1667_v10, 0.0  ;;  %v1041_v0 = vadd.f32 %v1009_v28, %v943_v53  ;;  %v1225_v63 = vrot.slane %v1204_v14, 7  ;;  %v1241_v48 = vrot.slane %v1205_v16, 7 }
 0x179   : > { %v1730_v31 = vmin.f32 %v1698_v26, 6.0  ;;  %v1500_v6 = vadd.f32 %v1468_v36, %v1435_v35  ;;  %v1501_v39 = vadd.f32 %v1469_v5, %v1436_v19  ;;  %v848_v9 = vmul.f32 %v3511_v30, %v2855_v41 }
 0x17a   : > { %v1731_v29 = vmin.f32 %v1699_v56, 6.0  ;;  %v1258_v37 = vsel %vm1246_vm2, %v1225_v63, %v1241_v48  ;;  %v1274_v27 = vsel %vm1246_vm2, %v1241_v48, %v1225_v63  ;;  %v849_v49 = vmul.f32 %v3513_v47, %v2855_v41 }
 0x17b   : > { %v1305_v22 = vsel %vm787_vm3, %v1274_v27, 0.0  ;;  %v1338_v23 = vadd.f32 %v1258_v37, %v1042_v12  ;;  %v1521_v58 = vrot.slane %v1500_v6, 1  ;;  %v1537_v8 = vrot.slane %v1501_v39, 1 }
 0x17c   : > { %v1752_v11 = vpack.c.bf16 %v1731_v29, %v1730_v31  ;;  %v1337_v20 = vadd.f32 %v1305_v22, %v1041_v0  ;;  %v913_v62 = vmul.f32 %v3562_v24, %v2861_v45  ;;  %v914_v61 = vmul.f32 %v3572_v17, %v2861_v45 }
 0x17d   : > { %v1554_v28 = vsel %vm1542_vm4, %v1521_v58, %v1537_v8  ;;  %v1570_v25 = vsel %vm1542_vm4, %v1537_v8, %v1521_v58  ;;  %v1076_v33 = vmul.f32 %v2857_v42, %v3511_v30  ;;  %v1077_v59 = vmul.f32 %v2857_v42, %v3513_v47 }
 0x17e   : > { %v1602_v34 = vsel %vm790_vm5, %v1570_v25, 0.0  ;;  %v1633_v13 = vadd.f32 %v1554_v28, %v1337_v20  ;;  %v1109_v2 = vmul.f32 %v2865_v50, %v3562_v24  ;;  %v1011_v18 = vmul.f32 %v2891_v3, %v3625_v60 }
 0x17f   : > { %v1634_v53 = vadd.f32 %v1602_v34, %v1338_v23  ;;  %v1012_v10 = vmul.f32 %v2891_v3, %v3627_v7  ;;  %v1110_v32 = vmul.f32 %v2865_v50, %v3572_v17  ;;  %v945_v15 = vadd.f32 %v913_v62, %v848_v9  ;;  %v3671_v34 = vld [vmem:[#allocation2 + $0xf0] sm:$0xff] }
 0x180   : > { %v1668_v38 = vadd.f32 %v3439_v1, %v1633_v13  ;;  %v946_v26 = vadd.f32 %v914_v61, %v849_v49  ;;  %v1141_v4 = vadd.f32 %v1109_v2, %v1076_v33  ;;  %v1174_v56 = vmul.f32 %v2872_v55, %v3625_v60 }
 0x181   : > { %2411 = vmatmul.msk.bf16.gmra.mxu2 %vm742_vm1, %v1752_v11  ;;  %v1669_v21 = vadd.f32 %v3439_v1, %v1634_v53  ;;  %v1142_v44 = vadd.f32 %v1110_v32, %v1077_v59  ;;  %v1175_v54 = vmul.f32 %v2872_v55, %v3627_v7  ;;  %v1372_v5 = vmul.f32 %v2863_v46, %v3511_v30  ;;  %v3684_v32 = vld [vmem:[#allocation2 + $0xf8] sm:$0xff] }
 0x182   : > { %v1700_v40 = vmax.f32 %v1668_v38, 0.0  ;;  %v1373_v31 = vmul.f32 %v2863_v46, %v3513_v47  ;;  %v1405_v14 = vmul.f32 %v2867_v51, %v3562_v24  ;;  %v1206_v16 = vadd.f32 %v1174_v56, %v1141_v4 }
 0x183   : > { %v1701_v36 = vmax.f32 %v1669_v21, 0.0  ;;  %v1207_v29 = vadd.f32 %v1175_v54, %v1142_v44  ;;  %v1406_v12 = vmul.f32 %v2867_v51, %v3572_v17  ;;  %v1043_v35 = vadd.f32 %v1011_v18, %v945_v15 }
 0x184   : > { %v1437_v19 = vadd.f32 %v1405_v14, %v1372_v5  ;;  %v1470_v0 = vmul.f32 %v3368_v52, %v3625_v60  ;;  %v1471_v63 = vmul.f32 %v3368_v52, %v3627_v7  ;;  %v1044_v30 = vadd.f32 %v1012_v10, %v946_v26 }
 0x185   : > { %v1226_v48 = vrot.slane %v1206_v16, 7  ;;  %v1242_v6 = vrot.slane %v1207_v29, 7  ;;  %v1438_v47 = vadd.f32 %v1406_v12, %v1373_v31  ;;  %v1732_v39 = vmin.f32 %v1700_v40, 6.0 }
 0x186   : > { %v1733_v11 = vmin.f32 %v1701_v36, 6.0  ;;  %v1502_v37 = vadd.f32 %v1470_v0, %v1437_v19  ;;  %v850_v28 = vmul.f32 %v3562_v24, %v2855_v41  ;;  %v915_v25 = vmul.f32 %v3625_v60, %v2861_v45 }
 0x187   : > { %v1259_v27 = vsel %vm1246_vm2, %v1226_v48, %v1242_v6  ;;  %v1275_v22 = vsel %vm1246_vm2, %v1242_v6, %v1226_v48  ;;  %v1503_v23 = vadd.f32 %v1471_v63, %v1438_v47  ;;  %v1078_v13 = vmul.f32 %v2857_v42, %v3562_v24 }
 0x188   : > { %v1307_v58 = vsel %vm787_vm3, %v1275_v22, 0.0  ;;  %v1522_v8 = vrot.slane %v1502_v37, 1  ;;  %v1340_v9 = vadd.f32 %v1259_v27, %v1044_v30  ;;  %v1753_v62 = vpack.c.bf16 %v1733_v11, %v1732_v39 }
 0x189   : > { %v1339_v20 = vadd.f32 %v1307_v58, %v1043_v35  ;;  %v1538_v49 = vrot.slane %v1503_v23, 1  ;;  %v1079_v53 = vmul.f32 %v2857_v42, %v3572_v17  ;;  %v851_v38 = vmul.f32 %v3572_v17, %v2855_v41 }
 0x18a   : > { %v916_v18 = vmul.f32 %v3627_v7, %v2861_v45  ;;  %v1111_v21 = vmul.f32 %v2865_v50, %v3625_v60  ;;  %v1112_v15 = vmul.f32 %v2865_v50, %v3627_v7  ;;  %v1013_v4 = vmul.f32 %v2891_v3, %v3671_v34 }
 0x18b   : > { %v1555_v61 = vsel %vm1542_vm4, %v1522_v8, %v1538_v49  ;;  %v1571_v33 = vsel %vm1542_vm4, %v1538_v49, %v1522_v8  ;;  %v1014_v40 = vmul.f32 %v2891_v3, %v3684_v32  ;;  %v1176_v44 = vmul.f32 %v2872_v55, %v3671_v34 }
 0x18c   : > { %v1604_v59 = vsel %vm790_vm5, %v1571_v33, 0.0  ;;  %v1635_v2 = vadd.f32 %v1555_v61, %v1339_v20  ;;  %v947_v54 = vadd.f32 %v915_v25, %v850_v28  ;;  %v1143_v36 = vadd.f32 %v1111_v21, %v1078_v13  ;;  %v3718_v61 = vpop.f32.mrf.mxu1 }
 0x18d   : > { %v1636_v10 = vadd.f32 %v1604_v59, %v1340_v9  ;;  %v1144_v5 = vadd.f32 %v1112_v15, %v1079_v53  ;;  %v948_v14 = vadd.f32 %v916_v18, %v851_v38  ;;  %v1177_v16 = vmul.f32 %v2872_v55, %v3684_v32  ;;  %v3724_v59 = vld [vmem:[#allocation2 + $0x100] sm:$0xff]  ;;  %v3730_v18 = vld [vmem:[#allocation2 + $0x108] sm:$0xff] }
 0x18e   : > { %v1670_v26 = vadd.f32 %v3439_v1, %v1635_v2  ;;  %v1374_v29 = vmul.f32 %v2863_v46, %v3562_v24  ;;  %v1208_v35 = vadd.f32 %v1176_v44, %v1143_v36  ;;  %v1375_v19 = vmul.f32 %v2863_v46, %v3572_v17 }
 0x18f   : > { %v1671_v56 = vadd.f32 %v3439_v1, %v1636_v10  ;;  %v1407_v0 = vmul.f32 %v2867_v51, %v3625_v60  ;;  %v1209_v63 = vadd.f32 %v1177_v16, %v1144_v5  ;;  %v1408_v30 = vmul.f32 %v2867_v51, %v3627_v7 }
 0x190   : > { %v1702_v31 = vmax.f32 %v1670_v26, 0.0  ;;  %v1472_v48 = vmul.f32 %v3368_v52, %v3671_v34  ;;  %v1227_v6 = vrot.slane %v1208_v35, 7  ;;  %v1473_v24 = vmul.f32 %v3368_v52, %v3684_v32 }
 0x191   : > { %2412 = vmatmul.msk.bf16.gmra.mxu2 %vm742_vm1, %v1753_v62  ;;  %v1703_v12 = vmax.f32 %v1671_v56, 0.0  ;;  %v1439_v47 = vadd.f32 %v1407_v0, %v1374_v29  ;;  %v1045_v39 = vadd.f32 %v1013_v4, %v947_v54  ;;  %v1046_v11 = vadd.f32 %v1014_v40, %v948_v14 }
 0x192   : > { %v1243_v37 = vrot.slane %v1209_v63, 7  ;;  %v1440_v27 = vadd.f32 %v1408_v30, %v1375_v19  ;;  %v1734_v17 = vmin.f32 %v1702_v31, 6.0  ;;  %v852_v13 = vmul.f32 %v3625_v60, %v2855_v41 }
 0x193   : > { %v1735_v22 = vmin.f32 %v1703_v12, 6.0  ;;  %v1504_v23 = vadd.f32 %v1472_v48, %v1439_v47  ;;  %v917_v53 = vmul.f32 %v3671_v34, %v2861_v45  ;;  %v1080_v10 = vmul.f32 %v2857_v42, %v3625_v60 }
 0x194   : > { %v1260_v58 = vsel %vm1246_vm2, %v1227_v6, %v1243_v37  ;;  %v1276_v8 = vsel %vm1246_vm2, %v1243_v37, %v1227_v6  ;;  %v1505_v20 = vadd.f32 %v1473_v24, %v1440_v27  ;;  %v1081_v21 = vmul.f32 %v2857_v42, %v3627_v7 }
 0x195   : > { %v1309_v9 = vsel %vm787_vm3, %v1276_v8, 0.0  ;;  %v1523_v49 = vrot.slane %v1504_v23, 1  ;;  %v1342_v28 = vadd.f32 %v1260_v58, %v1046_v11  ;;  %v1754_v33 = vpack.c.bf16 %v1735_v22, %v1734_v17  ;;  %v3769_v23 = vpop.f32.mrf.mxu1 }
 0x196   : > { %v1341_v62 = vadd.f32 %v1309_v9, %v1045_v39  ;;  %v1539_v25 = vrot.slane %v1505_v20, 1  ;;  %v853_v4 = vmul.f32 %v3627_v7, %v2855_v41  ;;  %v918_v40 = vmul.f32 %v3684_v32, %v2861_v45 }
 0x197   : > { %v1113_v56 = vmul.f32 %v2865_v50, %v3671_v34  ;;  %v1114_v54 = vmul.f32 %v2865_v50, %v3684_v32  ;;  %v1178_v36 = vmul.f32 %v2872_v55, %v3724_v59  ;;  %v949_v31 = vadd.f32 %v917_v53, %v852_v13 }
 0x198   : > { %v1556_v2 = vsel %vm1542_vm4, %v1523_v49, %v1539_v25  ;;  %v1572_v38 = vsel %vm1542_vm4, %v1539_v25, %v1523_v49  ;;  %v1015_v14 = vmul.f32 %v2891_v3, %v3724_v59  ;;  %v1179_v16 = vmul.f32 %v2872_v55, %v3730_v18 }
 0x199   : > { %v1606_v15 = vsel %vm790_vm5, %v1572_v38, 0.0  ;;  %v1637_v26 = vadd.f32 %v1556_v2, %v1341_v62  ;;  %v1145_v12 = vadd.f32 %v1113_v56, %v1080_v10  ;;  %v1146_v35 = vadd.f32 %v1114_v54, %v1081_v21  ;;  %v985_v54 = vld [vmem:[#allocation2 + $0x118] sm:$0xff] }
 0x19a   : > { %v1638_v44 = vadd.f32 %v1606_v15, %v1342_v28  ;;  %v1376_v19 = vmul.f32 %v2863_v46, %v3625_v60  ;;  %v950_v0 = vadd.f32 %v918_v40, %v853_v4  ;;  %v1016_v63 = vmul.f32 %v2891_v3, %v3730_v18  ;;  %v984_v40 = vld [vmem:[#allocation2 + $0x110] sm:$0xff] }
 0x19b   : > { %v1672_v5 = vadd.f32 %v3439_v1, %v1637_v26  ;;  %v1377_v30 = vmul.f32 %v2863_v46, %v3627_v7  ;;  %v1409_v48 = vmul.f32 %v2867_v51, %v3671_v34  ;;  %v1210_v24 = vadd.f32 %v1178_v36, %v1145_v12 }
 0x19c   : > { %v1673_v29 = vadd.f32 %v3439_v1, %v1638_v44  ;;  %v1211_v39 = vadd.f32 %v1179_v16, %v1146_v35  ;;  %v1410_v11 = vmul.f32 %v2867_v51, %v3684_v32  ;;  %v1474_v60 = vmul.f32 %v3368_v52, %v3724_v59 }
 0x19d   : > { %v1704_v6 = vmax.f32 %v1672_v5, 0.0  ;;  %v1441_v37 = vadd.f32 %v1409_v48, %v1376_v19  ;;  %v1047_v27 = vadd.f32 %v1015_v14, %v949_v31  ;;  %v1228_v17 = vrot.slane %v1210_v24, 7 }
 0x19e   : > { %v1705_v47 = vmax.f32 %v1673_v29, 0.0  ;;  %v1244_v22 = vrot.slane %v1211_v39, 7  ;;  %v1475_v7 = vmul.f32 %v3368_v52, %v3730_v18  ;;  %v1048_v58 = vadd.f32 %v1016_v63, %v950_v0  ;;  %v3808_v63 = vpop.f32.mrf.mxu1 }
 0x19f   : > { %v1442_v8 = vadd.f32 %v1410_v11, %v1377_v30  ;;  %v1506_v20 = vadd.f32 %v1474_v60, %v1441_v37  ;;  %v1736_v9 = vmin.f32 %v1704_v6, 6.0  ;;  %v854_v10 = vmul.f32 %v3671_v34, %v2855_v41 }
 0x1a0   : > { %v1737_v49 = vmin.f32 %v1705_v47, 6.0  ;;  %v1261_v62 = vsel %vm1246_vm2, %v1228_v17, %v1244_v22  ;;  %v1277_v28 = vsel %vm1246_vm2, %v1244_v22, %v1228_v17  ;;  %v855_v15 = vmul.f32 %v3684_v32, %v2855_v41 }
 0x1a1   : > { %2413 = vmatmul.msk.bf16.gmra.mxu2 %vm742_vm1, %v1754_v33  ;;  %v1311_v25 = vsel %vm787_vm3, %v1277_v28, 0.0  ;;  %v1507_v33 = vadd.f32 %v1475_v7, %v1442_v8  ;;  %v1524_v53 = vrot.slane %v1506_v20, 1  ;;  %v1344_v2 = vadd.f32 %v1261_v62, %v1048_v58 }
 0x1a2   : > { %v1343_v13 = vadd.f32 %v1311_v25, %v1047_v27  ;;  %v1755_v21 = vpack.c.bf16 %v1737_v49, %v1736_v9  ;;  %v919_v26 = vmul.f32 %v3724_v59, %v2861_v45  ;;  %v920_v4 = vmul.f32 %v3730_v18, %v2861_v45 }
 0x1a3   : > { %v1540_v38 = vrot.slane %v1507_v33, 1  ;;  %v1082_v36 = vmul.f32 %v2857_v42, %v3671_v34  ;;  %v1083_v41 = vmul.f32 %v2857_v42, %v3684_v32  ;;  %v1017_v45 = vmul.f32 %v2891_v3, %v984_v40 }
 0x1a4   : > { %v1018_v14 = vmul.f32 %v2891_v3, %v985_v54  ;;  %v1115_v29 = vmul.f32 %v2865_v50, %v3724_v59  ;;  %v1116_v12 = vmul.f32 %v2865_v50, %v3730_v18  ;;  %v1180_v35 = vmul.f32 %v2872_v55, %v984_v40 }
 0x1a5   : > { %v1557_v44 = vsel %vm1542_vm4, %v1524_v53, %v1540_v38  ;;  %v1573_v56 = vsel %vm1542_vm4, %v1540_v38, %v1524_v53  ;;  %v951_v42 = vadd.f32 %v919_v26, %v854_v10  ;;  %v1181_v19 = vmul.f32 %v2872_v55, %v985_v54 }
 0x1a6   : > { %v1608_v5 = vsel %vm790_vm5, %v1573_v56, 0.0  ;;  %v1639_v31 = vadd.f32 %v1557_v44, %v1343_v13  ;;  %v1378_v0 = vmul.f32 %v2863_v46, %v3671_v34  ;;  %v1379_v3 = vmul.f32 %v2863_v46, %v3684_v32  ;;  %v1858_v33 = vpop.f32.mrf.mxu1 }
 0x1a7   : > { %v1640_v16 = vadd.f32 %v1608_v5, %v1344_v2  ;;  %v952_v48 = vadd.f32 %v920_v4, %v855_v15  ;;  %v1147_v6 = vadd.f32 %v1115_v29, %v1082_v36  ;;  %v1148_v50 = vadd.f32 %v1116_v12, %v1083_v41 }
 0x1a8   : > { %v1674_v30 = vadd.f32 %v3439_v1, %v1639_v31  ;;  %v1411_v24 = vmul.f32 %v2867_v51, %v3724_v59  ;;  %v1412_v55 = vmul.f32 %v2867_v51, %v3730_v18  ;;  %v1476_v34 = vmul.f32 %v3368_v52, %v984_v40 }
 0x1a9   : > { %v1675_v47 = vadd.f32 %v3439_v1, %v1640_v16  ;;  %v1212_v39 = vadd.f32 %v1180_v35, %v1147_v6  ;;  %v1213_v11 = vadd.f32 %v1181_v19, %v1148_v50  ;;  %v1049_v37 = vadd.f32 %v1017_v45, %v951_v42 }
 0x1aa   : > { %v1443_v46 = vadd.f32 %v1411_v24, %v1378_v0  ;;  %v1444_v32 = vadd.f32 %v1412_v55, %v1379_v3  ;;  %v1477_v17 = vmul.f32 %v3368_v52, %v985_v54  ;;  %v1706_v22 = vmax.f32 %v1674_v30, 0.0  ;;  %v3851_v3 = vld [vmem:[%s4230_s6] ss:$0 sm:$0xff] }
 0x1ab   : > { %v1229_v60 = vrot.slane %v1212_v39, 7  ;;  %v1245_v27 = vrot.slane %v1213_v11, 7  ;;  %v1707_v7 = vmax.f32 %v1675_v47, 0.0  ;;  %v1050_v58 = vadd.f32 %v1018_v14, %v952_v48 }
 0x1ac   : > { %v1508_v8 = vadd.f32 %v1476_v34, %v1443_v46  ;;  %v1509_v18 = vadd.f32 %v1477_v17, %v1444_v32  ;;  %v1738_v62 = vmin.f32 %v1706_v22, 6.0  ;;  %v3855_v30 = vadd.f32 %v3851_v3, %v3769_v23 }
 0x1ad   : > { %v1262_v59 = vsel %vm1246_vm2, %v1229_v60, %v1245_v27  ;;  %v1278_v51 = vsel %vm1246_vm2, %v1245_v27, %v1229_v60  ;;  %v1739_v28 = vmin.f32 %v1707_v7, 6.0  ;;  %v3861_v6 = vadd.f32 %v3851_v3, %v3718_v61 }
 0x1ae   : > { %v1313_v20 = vsel %vm787_vm3, %v1278_v51, 0.0  ;;  %v1525_v9 = vrot.slane %v1508_v8, 1  ;;  %v1541_v49 = vrot.slane %v1509_v18, 1  ;;  %v1346_v52 = vadd.f32 %v1262_v59, %v1050_v58  ;;  %v1861_v4 = vpop.f32.mrf.mxu1 }
 0x1af   : > { %v1345_v25 = vadd.f32 %v1313_v20, %v1049_v37  ;;  %v1756_v38 = vpack.c.bf16 %v1739_v28, %v1738_v62  ;;  %v3865_v50 = vadd.f32 %v3851_v3, %v3808_v63  ;;  %v1932_v47 = vsel %vm540_vm0, %v3855_v30, 0.0 }
 0x1b0   : > { %v1558_v13 = vsel %vm1542_vm4, %v1525_v9, %v1541_v49  ;;  %v1574_v53 = vsel %vm1542_vm4, %v1541_v49, %v1525_v9  ;;  %v3870_v24 = vadd.f32 %v3851_v3, %v1858_v33  ;;  %v1931_v23 = vsel %vm540_vm0, %v3861_v6, 0.0 }
 0x1b1   : > { %2414 = vmatmul.msk.bf16.gmra.mxu2 %vm742_vm1, %v1755_v21  ;;  %v1610_v2 = vsel %vm790_vm5, %v1574_v53, 0.0  ;;  %v1641_v10 = vadd.f32 %v1558_v13, %v1345_v25  ;;  %v1934_v34 = vsel %vm540_vm0, %v3865_v50, 0.0  ;;  %v3877_v61 = vadd.f32 %v3851_v3, %v1861_v4 }
 0x1b2   : > { %v1642_v21 = vadd.f32 %v1610_v2, %v1346_v52  ;;  %v1933_v39 = vadd.f32 %v1932_v47, %v1931_v23  ;;  %v1936_v63 = vsel %vm540_vm0, %v3870_v24, 0.0 }
 0x1b3   : > { %v1676_v15 = vadd.f32 %v3439_v1, %v1641_v10  ;;  %v1938_v37 = vsel %vm540_vm0, %v3877_v61, 0.0 }
 0x1b4   : > { %v1677_v26 = vadd.f32 %v3439_v1, %v1642_v21  ;;  %v1935_v46 = vadd.f32 %v1934_v34, %v1933_v39 }
 0x1b5   : > { %v1708_v40 = vmax.f32 %v1676_v15, 0.0 }
 0x1b6   : > { %v1709_v44 = vmax.f32 %v1677_v26, 0.0  ;;  %v1863_v43 = vpop.f32.mrf.mxu1  ;;  %v1937_v27 = vadd.f32 %v1936_v63, %v1935_v46 }
 0x1b7   : > { %v1740_v56 = vmin.f32 %v1708_v40, 6.0  ;;  %v3882_v11 = vadd.f32 %v3851_v3, %v1863_v43 }
 0x1b8   : > { %v1741_v54 = vmin.f32 %v1709_v44, 6.0  ;;  %v1939_v7 = vadd.f32 %v1938_v37, %v1937_v27 }
 0x1b9   : > { %v1940_v17 = vsel %vm540_vm0, %v3882_v11, 0.0 }
 0x1ba   : > { %v1757_v36 = vpack.c.bf16 %v1741_v54, %v1740_v56  ;;  %v1941_v59 = vadd.f32 %v1940_v17, %v1939_v7 }
 0x1be   : > { %v1866_v57 = vpop.f32.mrf.mxu1 }
 0x1bf   : > { %v3887_v60 = vadd.f32 %v3851_v3, %v1866_v57 }
 0x1c1   : > { %2415 = vmatmul.msk.bf16.gmra.mxu2 %vm742_vm1, %v1756_v38  ;;  %v1942_v58 = vsel %vm540_vm0, %v3887_v60, 0.0 }
 0x1c2   : > { %v1943_v9 = vadd.f32 %v1942_v58, %v1941_v59 }
 0x1c6   : > { %v1868_v5 = vpop.f32.mrf.mxu1 }
 0x1c7   : > { %v3892_v22 = vadd.f32 %v3851_v3, %v1868_v5 }
 0x1c9   : > { %v1944_v18 = vsel %vm540_vm0, %v3892_v22, 0.0 }
 0x1ca   : > { %v1945_v25 = vadd.f32 %v1944_v18, %v1943_v9 }
 0x1ce   : > { %v1871_v45 = vpop.f32.mrf.mxu1 }
 0x1cf   : > { %v3897_v8 = vadd.f32 %v3851_v3, %v1871_v45 }
 0x1d1   : > { %2416 = vmatmul.msk.bf16.gmra.mxu2 %vm742_vm1, %v1757_v36  ;;  %v1946_v62 = vsel %vm540_vm0, %v3897_v8, 0.0 }
 0x1d2   : > { %v1947_v13 = vadd.f32 %v1946_v62, %v1945_v25 }
 0x1d6   : > { %v1873_v16 = vpop.f32.mrf.mxu1 }
 0x1d7   : > { %v3902_v20 = vadd.f32 %v3851_v3, %v1873_v16 }
 0x1d9   : > { %v1948_v52 = vsel %vm540_vm0, %v3902_v20, 0.0 }
 0x1da   : > { %v1949_v38 = vadd.f32 %v1948_v52, %v1947_v13 }
 0x1de   : > { %v1876_v29 = vpop.f32.mrf.mxu1 }
 0x1df   : > { %v3907_v28 = vadd.f32 %v3851_v3, %v1876_v29 }
 0x1e1   : > { %v1950_v53 = vsel %vm540_vm0, %v3907_v28, 0.0 }
 0x1e2   : > { %v3834_v41 = vpop.f32.mrf.mxu2  ;;  %v1951_v15 = vadd.f32 %v1950_v53, %v1949_v38 }
 0x1e6   : > { %v1878_v35 = vpop.f32.mrf.mxu1 }
 0x1e7   : > { %v3912_v33 = vadd.f32 %v3851_v3, %v1878_v35  ;;  %v3940_v35 = vadd.f32 %v3851_v3, %v3834_v41 }
 0x1e9   : > { %v1952_v10 = vsel %vm540_vm0, %v3912_v33, 0.0  ;;  %v1962_v23 = vsel %vm540_vm0, %v3940_v35, 0.0 }
 0x1ea   : > { %v3836_v31 = vpop.f32.mrf.mxu2  ;;  %v1953_v56 = vadd.f32 %v1952_v10, %v1951_v15  ;;  %v2625_v15 = vmov 256.0  }
 0x1eb   : > { %2515 = vrcp.f32 %v2625_v15 }
 0x1ee   : > { %v1881_v0 = vpop.f32.mrf.mxu1 }
 0x1ef   : > { %v3917_v2 = vadd.f32 %v3851_v3, %v1881_v0  ;;  %v3944_v0 = vadd.f32 %v3851_v3, %v3836_v31 }
 0x1f1   : > { %v1954_v40 = vsel %vm540_vm0, %v3917_v2, 0.0  ;;  %v1964_v34 = vsel %vm540_vm0, %v3944_v0, 0.0 }
 0x1f2   : > { %v1955_v43 = vadd.f32 %v1954_v40, %v1953_v56 }
 0x1f4   : > { %v3838_v14 = vpop.f32.mrf.mxu2 }
 0x1f6   : > { %v1883_v55 = vpop.f32.mrf.mxu1 }
 0x1f7   : > { %v3922_v21 = vadd.f32 %v3851_v3, %v1883_v55  ;;  %v3948_v55 = vadd.f32 %v3851_v3, %v3838_v14 }
 0x1f9   : > { %v1956_v54 = vsel %vm540_vm0, %v3922_v21, 0.0  ;;  %v1966_v31 = vsel %vm540_vm0, %v3948_v55, 0.0 }
 0x1fa   : > { %v1957_v5 = vadd.f32 %v1956_v54, %v1955_v43 }
 0x1fc   : > { %v3840_v1 = vpop.f32.mrf.mxu2 }
 0x1fd   : > { %v3956_v39 = vadd.f32 %v3851_v3, %v3840_v1 }
 0x1fe   : > { %v1886_v51 = vpop.f32.mrf.mxu1 }
 0x1ff   : > { %v3927_v44 = vadd.f32 %v3851_v3, %v1886_v51  ;;  %v1968_v37 = vsel %vm540_vm0, %v3956_v39, 0.0 }
 0x201   : > { %v1958_v57 = vsel %vm540_vm0, %v3927_v44, 0.0 }
 0x202   : > { %v1959_v16 = vadd.f32 %v1958_v57, %v1957_v5 }
 0x204   : > { %v3842_v12 = vpop.f32.mrf.mxu2 }
 0x205   : > { %v3962_v63 = vadd.f32 %v3851_v3, %v3842_v12 }
 0x206   : > { %v1888_v26 = vpop.f32.mrf.mxu1 }
 0x207   : > { %v3932_v36 = vadd.f32 %v3851_v3, %v1888_v26  ;;  %v1970_v1 = vsel %vm540_vm0, %v3962_v63, 0.0 }
 0x209   : > { %v1960_v45 = vsel %vm540_vm0, %v3932_v36, 0.0 }
 0x20a   : > { %v1961_v47 = vadd.f32 %v1960_v45, %v1959_v16  ;;  %v2516_v45 = vpop.eup %2515 }
 0x20b   : > { %vm2005_vm6 = vweird.f32 %v2516_v45 }
 0x20c   : > { %v3844_v42 = vpop.f32.mrf.mxu2  ;;  %v1963_v41 = vadd.f32 %v1962_v23, %v1961_v47 }
 0x20d   : > { %v3968_v27 = vadd.f32 %v3851_v3, %v3844_v42 }
 0x20e   : > { %v1965_v14 = vadd.f32 %v1964_v34, %v1963_v41  ;;  %v2001_v34 = vmul.f32 256.0, %v2516_v45 }
 0x20f   : > { %v1972_v12 = vsel %vm540_vm0, %v3968_v27, 0.0 }
 0x210   : > { %v1967_v17 = vadd.f32 %v1966_v31, %v1965_v14 }
 0x212   : > { %v1969_v58 = vadd.f32 %v1968_v37, %v1967_v17  ;;  %v2002_v17 = vsub.f32 1.0, %v2001_v34 }
 0x214   : > { %v3846_v19 = vpop.f32.mrf.mxu2  ;;  %v1971_v51 = vadd.f32 %v1970_v1, %v1969_v58 }
 0x215   : > { %v3974_v7 = vadd.f32 %v3851_v3, %v3846_v19 }
 0x216   : > { %v1973_v9 = vadd.f32 %v1972_v12, %v1971_v51  ;;  %v2003_v12 = vmul.f32 %v2516_v45, %v2002_v17 }
 0x217   : > { %v1974_v42 = vsel %vm540_vm0, %v3974_v7, 0.0 }
 0x218   : > { %v1975_v52 = vadd.f32 %v1974_v42, %v1973_v9  ;;  %v2004_v9 = vadd.f32 %v2516_v45, %v2003_v12 }
 0x21c   : > { %v3857_v48 = vpop.f32.mrf.mxu2 }
 0x21d   : > { %v3980_v59 = vadd.f32 %v3851_v3, %v3857_v48 }
 0x21f   : > { %v1976_v19 = vsel %vm540_vm0, %v3980_v59, 0.0 }
 0x220   : > { %v1977_v53 = vadd.f32 %v1976_v19, %v1975_v52  ;;  %v2006_v52 = vsel %vm2005_vm6, %v2516_v45, %v2004_v9 }
 0x224   : > { %v1911_v32 = vpop.f32.mrf.mxu2 }
 0x225   : > { %v3985_v18 = vadd.f32 %v3851_v3, %v1911_v32 }
 0x227   : > { %v1978_v48 = vsel %vm540_vm0, %v3985_v18, 0.0 }
 0x228   : > { %v1979_v10 = vadd.f32 %v1978_v48, %v1977_v53 }
 0x22c   : > { %v1913_v49 = vpop.f32.mrf.mxu2 }
 0x22d   : > { %v3990_v25 = vadd.f32 %v3851_v3, %v1913_v49 }
 0x22f   : > { %v1980_v32 = vsel %vm540_vm0, %v3990_v25, 0.0 }
 0x230   : > { %v1981_v40 = vadd.f32 %v1980_v32, %v1979_v10 }
 0x234   : > { %v1916_v4 = vpop.f32.mrf.mxu2 }
 0x235   : > { %v3995_v13 = vadd.f32 %v3851_v3, %v1916_v4 }
 0x237   : > { %v1982_v49 = vsel %vm540_vm0, %v3995_v13, 0.0 }
 0x238   : > { %v1983_v43 = vadd.f32 %v1982_v49, %v1981_v40  ;;  %v2514_v49 = vld [vmem:[%s4232_s8] ss:$0 sm:$0xff]  ;;  %v2627_v40 = vmov 0  }
 0x239   : > { %2508 = vset.pattern.permute.xlu2 %v2627_v40  ;;  %2507 = vset.pattern.permute.xlu1 %v2627_v40 }
 0x23a   : > { %2509 = vset.pattern.permute.xlu0 %v2627_v40 }
 0x23c   : > { %v1918_v29 = vpop.f32.mrf.mxu2 }
 0x23d   : > { %v4000_v38 = vadd.f32 %v3851_v3, %v1918_v29 }
 0x23f   : > { %v1984_v4 = vsel %vm540_vm0, %v4000_v38, 0.0 }
 0x240   : > { %v1985_v16 = vadd.f32 %v1984_v4, %v1983_v43 }
 0x244   : > { %v1921_v46 = vpop.f32.mrf.mxu2 }
 0x245   : > { %v4005_v26 = vadd.f32 %v3851_v3, %v1921_v46 }
 0x247   : > { %v1986_v57 = vsel %vm540_vm0, %v4005_v26, 0.0 }
 0x248   : > { %v1987_v47 = vadd.f32 %v1986_v57, %v1985_v16 }
 0x24c   : > { %v1923_v62 = vpop.f32.mrf.mxu2 }
 0x24d   : > { %v4010_v54 = vadd.f32 %v3851_v3, %v1923_v62 }
 0x24f   : > { %v1988_v29 = vsel %vm540_vm0, %v4010_v54, 0.0 }
 0x250   : > { %v1989_v41 = vadd.f32 %v1988_v29, %v1987_v47 }
 0x254   : > { %v1926_v56 = vpop.f32.mrf.mxu2 }
 0x255   : > { %v4015_v5 = vadd.f32 %v3851_v3, %v1926_v56  ;;  %v2010_v56 = vld [vmem:[%s4232_s8] sm:$0x1] }
 0x257   : > { %v1990_v23 = vsel %vm540_vm0, %v4015_v5, 0.0 }
 0x258   : > { %v1991_v46 = vadd.f32 %v1990_v23, %v1989_v41  ;;  %v2009_v23 = vld [vmem:[%s4233_s9] sm:$0x3] }
 0x25c   : > { %v1928_v31 = vpop.f32.mrf.mxu2 }
 0x25d   : > { %v4022_v14 = vadd.f32 %v3851_v3, %v1928_v31  ;;  %v2008_v3 = vld [vmem:[%s4231_s7] sm:$0x3] }
 0x25f   : > { %v1992_v37 = vsel %vm540_vm0, %v4022_v14, 0.0 }
 0x260   : > { %v1993_v1 = vadd.f32 %v1992_v37, %v1991_v46  ;;  %v2011_v37 = vld [vmem:[%s4234_s10] sm:$0x1] }
 0x262   : > { %v1994_v58 = vrot.slane %v1993_v1, 4 }
 0x264   : > { %v1995_v51 = vadd.f32 %v1994_v58, %v1993_v1 }
 0x266   : > { %v1996_v42 = vrot.slane %v1995_v51, 2 }
 0x268   : > { %v1997_v62 = vadd.f32 %v1996_v42, %v1995_v51 }
 0x26a   : > { %v1998_v19 = vrot.slane %v1997_v62, 1 }
 0x26c   : > { %v1999_v48 = vadd.f32 %v1998_v19, %v1997_v62 }
 0x26e   : > { %v2007_v53 = vmul.f32 %v2006_v52, %v1999_v48 }
 0x270   : > { %v2012_v32 = vmul.f32 %v2008_v3, %v2007_v53 }
 0x272   : > { %v2027_v10 = vsel %vm2026_vm7, %v2012_v32, 0.0  ;;  %v2014_v15 = vsel %vm2013_vm8, %v2012_v32, 0.0 }
 0x273   : > { %2028 = vadd.xlane.f32.xlu0 %v2027_v10  ;;  %2015 = vadd.xlane.f32.xlu1 %v2014_v15 }
 0x287   : > { %2032 = vrot.lane.b32.xlu0 %v2514_v49, %s2626_s27  ;;  %v408_v49 = vld [vmem:[%s2780_s13] sm:$0xff]   ;;  %s2200_s27 = scalar_lea.sflag [#allocation5], %s2776_s22 }
 0x2e6   : > { %v2016_v4 = vpop.xlane.xlu1 %2015  ;;  %v2029_v45 = vpop.xlane.xlu0 %2028 }
 0x2e7   : > { %v2017_v43 = vadd.f32 %v2016_v4, %v2010_v56  ;;  %v410_v56 = vld [vmem:[%s2780_s13 + $0x8] sm:$0xff]   ;;  %v2103_v4 = vunpack.c.l.bf16 %v408_v49 }
 0x2e9   : > { %v2018_v57 = vmax.f32 %v2017_v43, 0.0  ;;  %v2104_v43 = vunpack.c.h.bf16 %v408_v49 }
 0x2eb   : > { %2021 = vperm.xlu2 %2508, %v2018_v57   ;;  %v412_v57 = vld [vmem:[%s2780_s13 + $0x10] sm:$0xff]  }
 0x2f9   : > { %v2033_v16 = vpop.permute.xlu0 %2032 }
 0x2fa   : > { %v2035_v29 = vadd.f32 %v2033_v16, %v2029_v45  ;;  %v2105_v45 = vunpack.c.l.bf16 %v410_v56  ;;  %v414_v16 = vld [vmem:[%s2780_s13 + $0x18] sm:$0xff]  }
 0x2fc   : > { %v2036_v47 = vmax.f32 %v2035_v29, 0.0 }
 0x2fe   : > { %2039 = vperm.xlu1 %2507, %v2036_v47  }
 0x345   : > { %v2022_v31 = vpop.permute.xlu2 %2021 }
 0x346   : > { %v2024_v46 = vmul.f32 %v2022_v31, %v2009_v23  ;;  %v2107_v31 = vunpack.c.l.bf16 %v412_v57 }
 0x348   : > { %v2025_v17 = vadd.f32 %v2024_v46, %v2011_v37  ;;  %v2108_v37 = vunpack.c.h.bf16 %v412_v57 }
 0x370   : > { %v2040_v34 = vpop.permute.xlu1 %2039 }
 0x371   : > { %v2042_v41 = vmul.f32 %v2040_v34, %v2009_v23  ;;  %v2106_v34 = vunpack.c.h.bf16 %v410_v56 }
 0x373   : > { %2044 = vst [vmem:[#allocation1] sm:$0xff] %v2042_v41 }
 0x37a   : > { %v2046_v1 = vld [vmem:[#allocation1 + $0x1] ss:$9 sm:$0xff] }
 0x37b   : > { %v2048_v58 = vadd.f32 %v2046_v1, %v2025_v17  ;;  %v2109_v17 = vunpack.c.l.bf16 %v414_v16  ;;  %v416_v1 = vld [vmem:[%s2780_s13 + $0x20] sm:$0xff]  }
 0x37d   : > { %v2417_v12 = vmul.f32 -1.442695, %v2048_v58 }
 0x37f   : > { %2517 = vpow2.f32 %v2417_v12 }
 0x385   : > { %v2518_v51 = vpop.eup %2517 }
 0x386   : > { %v2052_v42 = vadd.f32 1.0, %v2518_v51  ;;  %v2110_v51 = vunpack.c.h.bf16 %v414_v16 }
 0x388   : > { %2519 = vrcp.f32 %v2052_v42  ;;  %v2064_v52 = vand.u32 2147483648, %v2052_v42  ;;  %v2062_v3 = vand.u32 2147483647, %v2052_v42  ;;  %vm2058_vm10 = vweird.f32 %v2052_v42 }
 0x38a   : > { %v2065_v32 = vor.u32 1.1754944e-38, %v2064_v52  ;;  %vm2063_vm12 = vcmp.eq.f32.partialorder %v2062_v3, 8.507059e+37 }
 0x38e   : > { %v2520_v9 = vpop.eup %2519 }
 0x38f   : > { %v2054_v62 = vmul.f32 %v2520_v9, %v2052_v42  ;;  %vm2059_vm9 = vweird.f32 %v2520_v9  ;;  %v418_v42 = vld [vmem:[%s2780_s13 + $0x28] sm:$0xff]  }
 0x390   : > { %vm2060_vm11 = vmor %vm2058_vm10, %vm2059_vm9 }
 0x391   : > { %v2055_v19 = vsub.f32 1.0, %v2054_v62 }
 0x393   : > { %v2056_v48 = vmul.f32 %v2520_v9, %v2055_v19 }
 0x395   : > { %v2057_v53 = vadd.f32 %v2520_v9, %v2056_v48 }
 0x397   : > { %v2061_v10 = vsel %vm2060_vm11, %v2520_v9, %v2057_v53  ;;  %v2114_v53 = vunpack.c.h.bf16 %v418_v42 }
 0x398   : > { %v2066_v15 = vsel %vm2063_vm12, %v2065_v32, %v2061_v10  ;;  %v422_v32 = vld [vmem:[%s2780_s13 + $0x38] sm:$0xff]  }
 0x399   : > { %v4042_v40 = vperm.slane %v2066_v15, 0  ;;  %v2118_v16 = vunpack.c.h.bf16 %v422_v32 }
 0x39b   : > { %v2071_v29 = vmul.f32 %v4042_v40, %v3861_v6  ;;  %v2072_v47 = vmul.f32 %v4042_v40, %v3855_v30  ;;  %v2073_v23 = vmul.f32 %v4042_v40, %v3865_v50  ;;  %v2074_v41 = vmul.f32 %v4042_v40, %v3870_v24 }
 0x39c   : > { %v2075_v46 = vmul.f32 %v4042_v40, %v3877_v61  ;;  %v2076_v6 = vmul.f32 %v4042_v40, %v3882_v11  ;;  %v2077_v30 = vmul.f32 %v4042_v40, %v3887_v60  ;;  %v2078_v24 = vmul.f32 %v4042_v40, %v3892_v22  ;;  %v420_v60 = vld [vmem:[%s2780_s13 + $0x30] sm:$0xff]  }
 0x39d   : > { %v2135_v58 = vadd.f32 %v2103_v4, %v2071_v29  ;;  %v2136_v50 = vadd.f32 %v2104_v43, %v2072_v47  ;;  %v2137_v12 = vadd.f32 %v2105_v45, %v2073_v23  ;;  %v2138_v9 = vadd.f32 %v2106_v34, %v2074_v41  ;;  %v424_v4 = vld [vmem:[%s2780_s13 + $0x40] sm:$0xff]   ;;  %v426_v29 = vld [vmem:[%s2780_s13 + $0x48] sm:$0xff]  }
 0x39e   : > { %v2111_v61 = vunpack.c.l.bf16 %v416_v1  ;;  %v2079_v62 = vmul.f32 %v4042_v40, %v3897_v8  ;;  %v2139_v19 = vadd.f32 %v2107_v31, %v2075_v46  ;;  %v2112_v11 = vunpack.c.h.bf16 %v416_v1  ;;  %v428_v31 = vld [vmem:[%s2780_s13 + $0x50] sm:$0xff]  }
 0x39f   : > { %2167 = vst.msk [vmem:[%s4068_s23] sm:$0xff] %vm540_vm0, %v2135_v58  ;;  %v2080_v22 = vmul.f32 %v4042_v40, %v3902_v20  ;;  %v2140_v52 = vadd.f32 %v2108_v37, %v2076_v6  ;;  %v2113_v8 = vunpack.c.l.bf16 %v418_v42  ;;  %v2081_v48 = vmul.f32 %v4042_v40, %v3907_v28  ;;  %v430_v6 = vld [vmem:[%s2780_s13 + $0x58] sm:$0xff]  }
 0x3a0   : > { %2168 = vst.msk [vmem:[%s4068_s23 + $0x8] sm:$0xff] %vm540_vm0, %v2136_v50  ;;  %v2141_v3 = vadd.f32 %v2109_v17, %v2077_v30  ;;  %v2082_v10 = vmul.f32 %v4042_v40, %v3912_v33  ;;  %v2142_v15 = vadd.f32 %v2110_v51, %v2078_v24  ;;  %v2115_v20 = vunpack.c.l.bf16 %v420_v60  ;;  %v432_v51 = vld [vmem:[%s2780_s13 + $0x60] sm:$0xff]  }
 0x3a1   : > { %2169 = vst.msk [vmem:[%s4068_s23 + $0x10] sm:$0xff] %vm540_vm0, %v2137_v12  ;;  %v2083_v49 = vmul.f32 %v4042_v40, %v3917_v2  ;;  %v2143_v28 = vadd.f32 %v2111_v61, %v2079_v62  ;;  %v2116_v56 = vunpack.c.h.bf16 %v420_v60  ;;  %v2084_v43 = vmul.f32 %v4042_v40, %v3922_v21  ;;  %v434_v62 = vld [vmem:[%s2780_s13 + $0x68] sm:$0xff]  }
 0x3a2   : > { %2170 = vst.msk [vmem:[%s4068_s23 + $0x18] sm:$0xff] %vm540_vm0, %v2138_v9  ;;  %v2144_v57 = vadd.f32 %v2112_v11, %v2080_v22  ;;  %v2117_v33 = vunpack.c.l.bf16 %v422_v32  ;;  %v2085_v45 = vmul.f32 %v4042_v40, %v3927_v44  ;;  %v2145_v2 = vadd.f32 %v2113_v8, %v2081_v48  ;;  %v438_v32 = vld [vmem:[%s2780_s13 + $0x78] sm:$0xff]  }
 0x3a3   : > { %2171 = vst.msk [vmem:[%s4068_s23 + $0x20] sm:$0xff] %vm540_vm0, %v2139_v19  ;;  %v2086_v47 = vmul.f32 %v4042_v40, %v3932_v36  ;;  %v2146_v23 = vadd.f32 %v2114_v53, %v2082_v10  ;;  %v2119_v21 = vunpack.c.l.bf16 %v424_v4  ;;  %v2087_v34 = vmul.f32 %v4042_v40, %v3940_v35 }
 0x3a4   : > { %2172 = vst.msk [vmem:[%s4068_s23 + $0x28] sm:$0xff] %vm540_vm0, %v2140_v52  ;;  %v2147_v44 = vadd.f32 %v2115_v20, %v2083_v49  ;;  %v2120_v41 = vunpack.c.h.bf16 %v424_v4  ;;  %v2088_v46 = vmul.f32 %v4042_v40, %v3944_v0  ;;  %v2148_v37 = vadd.f32 %v2116_v56, %v2084_v43  ;;  %v436_v52 = vld [vmem:[%s2780_s13 + $0x70] sm:$0xff]  }
 0x3a5   : > { %2173 = vst.msk [vmem:[%s4068_s23 + $0x30] sm:$0xff] %vm540_vm0, %v2141_v3  ;;  %v2121_v36 = vunpack.c.l.bf16 %v426_v29  ;;  %v2089_v17 = vmul.f32 %v4042_v40, %v3948_v55  ;;  %v2149_v35 = vadd.f32 %v2117_v33, %v2085_v45  ;;  %v2122_v1 = vunpack.c.h.bf16 %v426_v29 }
 0x3a6   : > { %2174 = vst.msk [vmem:[%s4068_s23 + $0x38] sm:$0xff] %vm540_vm0, %v2142_v15  ;;  %v2090_v30 = vmul.f32 %v4042_v40, %v3956_v39  ;;  %v2150_v58 = vadd.f32 %v2118_v16, %v2086_v47  ;;  %v2123_v0 = vunpack.c.l.bf16 %v428_v31  ;;  %v2091_v50 = vmul.f32 %v4042_v40, %v3962_v63 }
 0x3a7   : > { %2175 = vst.msk [vmem:[%s4068_s23 + $0x40] sm:$0xff] %vm540_vm0, %v2143_v28  ;;  %v2151_v55 = vadd.f32 %v2119_v21, %v2087_v34  ;;  %v2124_v12 = vunpack.c.h.bf16 %v428_v31  ;;  %v2092_v42 = vmul.f32 %v4042_v40, %v3968_v27  ;;  %v2152_v24 = vadd.f32 %v2120_v41, %v2088_v46 }
 0x3a8   : > { %2176 = vst.msk [vmem:[%s4068_s23 + $0x48] sm:$0xff] %vm540_vm0, %v2144_v57  ;;  %v2125_v39 = vunpack.c.l.bf16 %v430_v6  ;;  %v2093_v9 = vmul.f32 %v4042_v40, %v3974_v7  ;;  %v2153_v63 = vadd.f32 %v2121_v36, %v2089_v17  ;;  %v2126_v61 = vunpack.c.h.bf16 %v430_v6 }
 0x3a9   : > { %2177 = vst.msk [vmem:[%s4068_s23 + $0x50] sm:$0xff] %vm540_vm0, %v2145_v2  ;;  %v2094_v19 = vmul.f32 %v4042_v40, %v3980_v59  ;;  %v2154_v11 = vadd.f32 %v2122_v1, %v2090_v30  ;;  %v2127_v27 = vunpack.c.l.bf16 %v432_v51  ;;  %v2095_v60 = vmul.f32 %v4042_v40, %v3985_v18 }
 0x3aa   : > { %2178 = vst.msk [vmem:[%s4068_s23 + $0x58] sm:$0xff] %vm540_vm0, %v2146_v23  ;;  %v2155_v7 = vadd.f32 %v2123_v0, %v2091_v50  ;;  %v2128_v22 = vunpack.c.h.bf16 %v432_v51  ;;  %v2096_v8 = vmul.f32 %v4042_v40, %v3990_v25  ;;  %v2156_v59 = vadd.f32 %v2124_v12, %v2092_v42 }
 0x3ab   : > { %2179 = vst.msk [vmem:[%s4068_s23 + $0x60] sm:$0xff] %vm540_vm0, %v2147_v44  ;;  %v2129_v48 = vunpack.c.l.bf16 %v434_v62  ;;  %v2097_v3 = vmul.f32 %v4042_v40, %v3995_v13  ;;  %v2157_v18 = vadd.f32 %v2125_v39, %v2093_v9  ;;  %v2130_v53 = vunpack.c.h.bf16 %v434_v62 }
 0x3ac   : > { %2180 = vst.msk [vmem:[%s4068_s23 + $0x68] sm:$0xff] %vm540_vm0, %v2148_v37  ;;  %v2098_v10 = vmul.f32 %v4042_v40, %v4000_v38  ;;  %v2158_v15 = vadd.f32 %v2126_v61, %v2094_v19  ;;  %v2131_v25 = vunpack.c.l.bf16 %v436_v52  ;;  %v2099_v20 = vmul.f32 %v4042_v40, %v4005_v26 }
 0x3ad   : > { %2181 = vst.msk [vmem:[%s4068_s23 + $0x70] sm:$0xff] %vm540_vm0, %v2149_v35  ;;  %v2159_v13 = vadd.f32 %v2127_v27, %v2095_v60  ;;  %v2132_v49 = vunpack.c.h.bf16 %v436_v52  ;;  %v2100_v28 = vmul.f32 %v4042_v40, %v4010_v54  ;;  %v2160_v38 = vadd.f32 %v2128_v22, %v2096_v8 }
 0x3ae   : > { %2182 = vst.msk [vmem:[%s4068_s23 + $0x78] sm:$0xff] %vm540_vm0, %v2150_v58  ;;  %v2133_v56 = vunpack.c.l.bf16 %v438_v32  ;;  %v2101_v4 = vmul.f32 %v4042_v40, %v4015_v5  ;;  %v2161_v43 = vadd.f32 %v2129_v48, %v2097_v3  ;;  %v2134_v26 = vunpack.c.h.bf16 %v438_v32 }
 0x3af   : > { %2183 = vst.msk [vmem:[%s4068_s23 + $0x80] sm:$0xff] %vm540_vm0, %v2151_v55  ;;  %v2102_v54 = vmul.f32 %v4042_v40, %v4022_v14  ;;  %v2162_v57 = vadd.f32 %v2130_v53, %v2098_v10  ;;  %v2163_v5 = vadd.f32 %v2131_v25, %v2099_v20  ;;  %v2164_v33 = vadd.f32 %v2132_v49, %v2100_v28 }
 0x3b0   : > { %2184 = vst.msk [vmem:[%s4068_s23 + $0x88] sm:$0xff] %vm540_vm0, %v2152_v24  ;;  %v2165_v45 = vadd.f32 %v2133_v56, %v2101_v4 }
 0x3b1   : > { %2185 = vst.msk [vmem:[%s4068_s23 + $0x90] sm:$0xff] %vm540_vm0, %v2153_v63  ;;  %v2166_v14 = vadd.f32 %v2134_v26, %v2102_v54 }
 0x3b2   : > { %2186 = vst.msk [vmem:[%s4068_s23 + $0x98] sm:$0xff] %vm540_vm0, %v2154_v11 }
 0x3b3   : > { %2187 = vst.msk [vmem:[%s4068_s23 + $0xa0] sm:$0xff] %vm540_vm0, %v2155_v7 }
 0x3b4   : > { %2188 = vst.msk [vmem:[%s4068_s23 + $0xa8] sm:$0xff] %vm540_vm0, %v2156_v59 }
 0x3b5   : > { %2189 = vst.msk [vmem:[%s4068_s23 + $0xb0] sm:$0xff] %vm540_vm0, %v2157_v18 }
 0x3b6   : > { %2190 = vst.msk [vmem:[%s4068_s23 + $0xb8] sm:$0xff] %vm540_vm0, %v2158_v15 }
 0x3b7   : > { %2191 = vst.msk [vmem:[%s4068_s23 + $0xc0] sm:$0xff] %vm540_vm0, %v2159_v13 }
 0x3b8   : > { %2192 = vst.msk [vmem:[%s4068_s23 + $0xc8] sm:$0xff] %vm540_vm0, %v2160_v38 }
 0x3b9   : > { %2193 = vst.msk [vmem:[%s4068_s23 + $0xd0] sm:$0xff] %vm540_vm0, %v2161_v43 }
 0x3ba   : > { %2194 = vst.msk [vmem:[%s4068_s23 + $0xd8] sm:$0xff] %vm540_vm0, %v2162_v57 }
 0x3bb   : > { %2195 = vst.msk [vmem:[%s4068_s23 + $0xe0] sm:$0xff] %vm540_vm0, %v2163_v5 }
 0x3bc   : > { %2196 = vst.msk [vmem:[%s4068_s23 + $0xe8] sm:$0xff] %vm540_vm0, %v2164_v33 }
 0x3bd   : > { %2197 = vst.msk [vmem:[%s4068_s23 + $0xf0] sm:$0xff] %vm540_vm0, %v2165_v45 }
 0x3be   : > { %2198 = vst.msk [vmem:[%s4068_s23 + $0xf8] sm:$0xff] %vm540_vm0, %v2166_v14 }
 0x3bf   : > { %2581 = shalt.err (!%p2578_p4)
}
 0x3c0   : > { %s2628_s22 = smov 128   ;;  %s2629_s23 = smov 8  }
 0x3c1   : > { %2455 = dma.vmem_to_hbm [thread:$0]  (%p2740_p11), %s2213_s28, 4096, %s2215_s14, %s2200_s27, %s2628_s22, %s2628_s22, %s2629_s23  }
 0x3c2 PF: > { %s4251_s26 = sld [smem:[#allocation9_spill]]  ;;  %p4253_p7 = scmp.ge.s32.totalorder %s2620_s20, 2 }
 0x3c4   : > { %p2462_p5 = pnand %p4253_p7, %p2744_p12 }
 0x3c6   : > { %p2463_p8 = pneg %p2462_p5 }
 0x3c8   : > { %s2229_s13 = sand.u32 1, %s4251_s26  }
 0x3c9   : > { %s2230_s25 = scalar_lea.sflag [#allocation5], %s2229_s13 }
 0x3ca   : > { %2603 = dma.done.wait (%p2463_p8), %s2230_s25, 4096  }
 0x3cb   : > { %2605 = vsyncadd (%p2463_p8), %s2230_s25, 4294963200  ;;  %s4254_s20 = sld [smem:[#allocation11_spill]]  ;;  %s4257_s17 = smov %s2612_s18 }
 0x3cc   : > { %s4255_s15 = sld [smem:[#allocation10_spill]] }
 0x3cd   : > { %s4256_s19 = sld [smem:[#allocation12_spill]] }
 0x3d1   : > { %p24_p10 = scmp.ge.s32.totalorder %s4254_s20, 4  }
 0x3d2   : > { %s4258_s18 = smov %s4255_s15 }
 0x3d3   :  { %26 = sbr.rel (!%p24_p10) target bundleno = 5 (0x5), region = 113 }
 0x3d8   :  { %2236 = vsyncpa [#allocation4], 1 }
 0x3d9   :  { %2238 = vsyncpa [#allocation4 + $0x1], 1 }
 0x3da   :  { %2239 = vsyncpa [#allocation5], 1 }
 0x3db   :  { %2241 = vsyncpa [#allocation5 + $0x1], 1 }

</bundles_post_ra>
